<compile_context>
chip_gen: v6e
topology: v6e:2x2x1
jax: 0.10.0
libtpu: 0.0.40
codegen_flags: <defaults>
</compile_context>

<pallas_src>
import functools

import jax
import jax.numpy as jnp
from jax.experimental import pallas as pl
from jax.experimental.pallas import tpu as pltpu


def _round_up(x, m):
    return (x + m - 1) // m * m


# ----------------------------- Pallas kernel -----------------------------

def _text_encoder_kernel(emb_ref, len_ref, wih_ref, whh_ref, bias_ref,
                         ow_ref, ob_ref, out_ref, gates_ref):
    # emb_ref  : [T, TB, E]  bf16, time-major batch tile
    # len_ref  : [TB, H]     int32, per-row sequence length broadcast lane-dense
    # wih_ref  : [E, 4H]     bf16      whh_ref: [H, 4H] f32 (tiny, kept f32 for recurrent precision)
    # bias_ref : [1, 4H]     f32 (b_ih + b_hh)
    # ow_ref   : [H, O_pad]  bf16      ob_ref : [1, O_pad] f32   (zero-padded to lane-dense O_pad)
    # out_ref  : [TB, O_pad] f32
    # gates_ref: [T*TB, 4H]  bf16 VMEM scratch (hoisted input projection)
    T, TB, E = emb_ref.shape
    H = whh_ref.shape[0]

    # (1) Hoisted input projection: ONE [T*TB, E] @ [E, 4H] MXU matmul for the whole tile
    #     (bf16 in, f32 acc, bf16 scratch store -> half the vst / VMEM of an f32 scratch).
    x = emb_ref[...].reshape(T * TB, E)
    gates_ref[...] = jnp.dot(
        x, wih_ref[...], preferred_element_type=jnp.float32).astype(jnp.bfloat16)

    whh = whh_ref[...]                                        # [H, 4H] f32, loop-resident
    bias_b = jnp.broadcast_to(bias_ref[...], (TB, 4 * H))     # hoisted broadcast (not CSE'd in loops)
    len_b = len_ref[...]                                      # [TB, H] int32, lane-dense lengths

    h0 = jnp.zeros((TB, H), jnp.float32)
    c0 = jnp.zeros((TB, H), jnp.float32)

    # (2) Recurrence: only h @ W_hh + elementwise gate math per step.  PyTorch gate order i, f, g, o.
    def step(t, carry):
        h, c = carry
        row = pl.multiple_of(t * TB, TB)
        g = (gates_ref[pl.ds(row, TB), :].astype(jnp.float32)     # widen bf16 scratch
             + bias_b
             + jnp.dot(h, whh, preferred_element_type=jnp.float32))
        i = jax.nn.sigmoid(g[:, 0:H])
        f = jax.nn.sigmoid(g[:, H:2 * H])
        gg = jnp.tanh(g[:, 2 * H:3 * H])
        o = jax.nn.sigmoid(g[:, 3 * H:4 * H])
        c_new = f * c + i * gg
        h_new = o * jnp.tanh(c_new)
        # pack_padded_sequence freeze: lane-dense validity -> one VPU compare + one vsel per state.
        valid = t < len_b                                         # [TB, H] bool
        h = jnp.where(valid, h_new, h)
        c = jnp.where(valid, c_new, c)
        return h, c

    h, _ = jax.lax.fori_loop(0, T, step, (h0, c0), unroll=min(T, 8))

    # (3) Fused output_bridge Linear epilogue, lane-dense (padded O) unmasked store.
    out_ref[...] = (
        jnp.dot(h.astype(jnp.bfloat16), ow_ref[...], preferred_element_type=jnp.float32)
        + ob_ref[...]
    )


# ----------------------------- wrapper -----------------------------

@functools.partial(jax.jit, static_argnames=())
def text_encoder_forward(params, captions, lengths):
    """JAX/Pallas equivalent of TextEncoder.forward (LSTM variant)."""
    B, T = captions.shape
    E = params['embed_w'].shape[1]
    H = params['lstm_w_hh'].shape[1]          # PyTorch layout [4H, H]
    O = params['out_bridge_w'].shape[0]       # PyTorch layout [O, H]

    TB = min(128, _round_up(B, 16))           # batch tile: multiple of 16 (bf16 sublane pack)
    Bp = _round_up(B, TB)
    Op = _round_up(O, 128)                    # lane-dense output width

    # nn.Embedding lookup: XLA gather in glue (see TODO above), then pad batch + time-major layout.
    emb = jnp.take(params['embed_w'], captions, axis=0)               # [B, T, E]
    emb = jnp.pad(emb, ((0, Bp - B), (0, 0), (0, 0)))                 # pad rows -> zeros
    emb_tm = jnp.transpose(emb, (1, 0, 2))                            # [T, Bp, E]

    # Lane-dense per-row lengths (pad rows get length 0 -> state frozen at the zero init).
    lengths_p = jnp.pad(lengths.astype(jnp.int32), (0, Bp - B))
    len_b = jnp.broadcast_to(lengths_p[:, None], (Bp, H))             # [Bp, H] int32

    # MXU-friendly right-multiply layouts; combine the two LSTM biases; pad output_bridge to Op.
    w_ih = params['lstm_w_ih'].T                                      # [E, 4H]
    w_hh = params['lstm_w_hh'].T                                      # [H, 4H]
    bias = (params['lstm_b_ih'] + params['lstm_b_hh']).reshape(1, 4 * H)
    out_w = jnp.zeros((H, Op), jnp.float32).at[:, :O].set(params['out_bridge_w'].T)
    out_b = jnp.zeros((1, Op), jnp.float32).at[:, :O].set(params['out_bridge_b'][None, :])

    grid = (Bp // TB,)
    out_padded = pl.pallas_call(
        _text_encoder_kernel,
        out_shape=jax.ShapeDtypeStruct((Bp, Op), jnp.float32),
        grid_spec=pltpu.PrefetchScalarGridSpec(
            num_scalar_prefetch=0,
            grid=grid,
            in_specs=[
                pl.BlockSpec((T, TB, E), lambda i: (0, i, 0)),        # embeddings, batch-tiled
                pl.BlockSpec((TB, H), lambda i: (i, 0)),              # lengths slab, batch-tiled
                pl.BlockSpec((E, 4 * H), lambda i: (0, 0)),           # W_ih (replicated per tile)
                pl.BlockSpec((H, 4 * H), lambda i: (0, 0)),           # W_hh
                pl.BlockSpec((1, 4 * H), lambda i: (0, 0)),           # bias
                pl.BlockSpec((H, Op), lambda i: (0, 0)),              # output_bridge W (padded)
                pl.BlockSpec((1, Op), lambda i: (0, 0)),              # output_bridge b (padded)
            ],
            out_specs=pl.BlockSpec((TB, Op), lambda i: (i, 0)),
            scratch_shapes=[pltpu.VMEM((T * TB, 4 * H), jnp.bfloat16)],
        ),
        compiler_params=pltpu.CompilerParams(
            dimension_semantics=("parallel",),                        # v7x: two TCs split batch tiles
            vmem_limit_bytes=32 * 1024 * 1024,
        ),
    )(emb_tm.astype(jnp.bfloat16),
      len_b,
      w_ih.astype(jnp.bfloat16),
      w_hh.astype(jnp.float32),
      bias.astype(jnp.float32),
      out_w.astype(jnp.bfloat16),
      out_b.astype(jnp.float32))

    return out_padded[:B, :O]


# ----------------------------- pure-JAX reference (for verification) -----------------------------

def text_encoder_reference(params, captions, lengths):
    emb = jnp.take(params['embed_w'], captions, axis=0)               # [B, T, E]
    B, T, _ = emb.shape
    H = params['lstm_w_hh'].shape[1]
    w_ih = params['lstm_w_ih'].T
    w_hh = params['lstm_w_hh'].T
    b = params['lstm_b_ih'] + params['lstm_b_hh']

    def step(carry, t):
        h, c = carry
        x_t = emb[:, t, :]
        gates = x_t @ w_ih + h @ w_hh + b
        i, f, g, o = jnp.split(gates, 4, axis=-1)
        i = jax.nn.sigmoid(i)
        f = jax.nn.sigmoid(f)
        g = jnp.tanh(g)
        o = jax.nn.sigmoid(o)
        c_new = f * c + i * g
        h_new = o * jnp.tanh(c_new)
        m = (t < lengths).astype(jnp.float32)[:, None]
        return (m * h_new + (1.0 - m) * h, m * c_new + (1.0 - m) * c), None

    init = (jnp.zeros((B, H), jnp.float32), jnp.zeros((B, H), jnp.float32))
    (h, _), _ = jax.lax.scan(step, init, jnp.arange(T))
    return h @ params['out_bridge_w'].T + params['out_bridge_b']


# ----------------------------- deterministic init (matches PyTorch init_weights) -----------------

def init_params(key, output_dim=32, embed_dim=32, hidden_dim=32, vocab_size=50):
    ks = jax.random.split(key, 6)
    k = 1.0 / (hidden_dim ** 0.5)             # PyTorch LSTM default init bound
    return {
        'embed_w': jax.random.uniform(ks[0], (vocab_size, embed_dim), jnp.float32, -0.1, 0.1),
        'lstm_w_ih': jax.random.uniform(ks[1], (4 * hidden_dim, embed_dim), jnp.float32, -k, k),
        'lstm_w_hh': jax.random.uniform(ks[2], (4 * hidden_dim, hidden_dim), jnp.float32, -k, k),
        'lstm_b_ih': jax.random.uniform(ks[3], (4 * hidden_dim,), jnp.float32, -k, k),
        'lstm_b_hh': jax.random.uniform(ks[4], (4 * hidden_dim,), jnp.float32, -k, k),
        'out_bridge_w': jax.random.uniform(ks[5], (output_dim, hidden_dim), jnp.float32, -0.1, 0.1),
        'out_bridge_b': jnp.zeros((output_dim,), jnp.float32),
    }


# ----------------------------- main -----------------------------

if __name__ == "__main__":
    key = jax.random.PRNGKey(0)
    k_cap, k_par = jax.random.split(key, 2)

    B, T = 2, 8
    embed_dim, hidden_dim, output_dim, vocab_size = 32, 32, 32, 50

    captions = jax.random.randint(k_cap, (B, T), 0, vocab_size, jnp.int32)   # [B, max_len]
    lengths = jnp.array([8, 5], jnp.int32)    # sorted descending, as pack_padded_sequence expects

    params = init_params(k_par, output_dim=output_dim, embed_dim=embed_dim,
                         hidden_dim=hidden_dim, vocab_size=vocab_size)

    out = jax.block_until_ready(text_encoder_forward(params, captions, lengths))

    assert out.shape == (B, output_dim), out.shape
    assert bool(jnp.all(jnp.isfinite(out)))

    ref = jax.jit(text_encoder_reference)(params, captions, lengths)
    assert bool(jnp.allclose(out, ref, atol=3e-2, rtol=3e-2)), (out, ref)

    print("KERNEL_OK")
</pallas_src>

<mosaic_0001>
module attributes {stable_mosaic.version = 11 : i64} {
  func.func @_text_encoder_kernel(%arg0: i32, %arg1: memref<8x16x32xbf16, #tpu.memory_space<vmem>>, %arg2: memref<16x32xi32, #tpu.memory_space<vmem>>, %arg3: memref<32x128xbf16, #tpu.memory_space<vmem>>, %arg4: memref<32x128xf32, #tpu.memory_space<vmem>>, %arg5: memref<1x128xf32, #tpu.memory_space<vmem>>, %arg6: memref<32x128xbf16, #tpu.memory_space<vmem>>, %arg7: memref<1x128xf32, #tpu.memory_space<vmem>>, %arg8: memref<16x128xf32, #tpu.memory_space<vmem>>, %arg9: memref<128x128xbf16, #tpu.memory_space<vmem>>) attributes {dimension_semantics = [#tpu.dimension_semantics<parallel>], iteration_bounds = array<i64: 1>, scalar_prefetch = 0 : i64, scratch_operands = 1 : i64, tpu.core_type = #tpu.core_type<tc>, window_params = [{transform_indices = @transform_0, window_bounds = array<i64: 8, 16, 32>}, {transform_indices = @transform_1, window_bounds = array<i64: 16, 32>}, {pipeline_mode = #tpu.pipeline_mode<synchronous>, transform_indices = @transform_2, window_bounds = array<i64: 32, 128>}, {pipeline_mode = #tpu.pipeline_mode<synchronous>, transform_indices = @transform_3, window_bounds = array<i64: 32, 128>}, {pipeline_mode = #tpu.pipeline_mode<synchronous>, transform_indices = @transform_4, window_bounds = array<i64: 1, 128>}, {pipeline_mode = #tpu.pipeline_mode<synchronous>, transform_indices = @transform_5, window_bounds = array<i64: 32, 128>}, {pipeline_mode = #tpu.pipeline_mode<synchronous>, transform_indices = @transform_6, window_bounds = array<i64: 1, 128>}, {transform_indices = @transform_7, window_bounds = array<i64: 16, 128>}]} {
    %c0 = arith.constant 0 : index
    %c0_0 = arith.constant 0 : index
    %c0_1 = arith.constant 0 : index
    %0 = vector.load %arg1[%c0, %c0_0, %c0_1] : memref<8x16x32xbf16, #tpu.memory_space<vmem>>, vector<8x16x32xbf16>
    %1 = vector.shape_cast %0 : vector<8x16x32xbf16> to vector<128x32xbf16>
    %c0_2 = arith.constant 0 : index
    %c0_3 = arith.constant 0 : index
    %2 = vector.load %arg3[%c0_2, %c0_3] : memref<32x128xbf16, #tpu.memory_space<vmem>>, vector<32x128xbf16>
    %cst = arith.constant dense<0.000000e+00> : vector<128x128xf32>
    %3 = tpu.matmul %1, %2, %cst {dimension_numbers = #tpu.dot_dimension_numbers<[1], [0], [0], [1], [0, 0, 1, 1], [], []>} : vector<128x32xbf16>, vector<32x128xbf16>, vector<128x128xf32> -> vector<128x128xf32>
    %4 = arith.truncf %3 : vector<128x128xf32> to vector<128x128xbf16>
    %c0_4 = arith.constant 0 : index
    %c0_5 = arith.constant 0 : index
    %5 = vector.load %arg9[%c0_4, %c0_5] : memref<128x128xbf16, #tpu.memory_space<vmem>>, vector<128x128xbf16>
    tpu.vector_store %arg9[%c0_4, %c0_5], %4 {strides = array<i32>} : memref<128x128xbf16, #tpu.memory_space<vmem>>, vector<128x128xbf16>,
    %c0_6 = arith.constant 0 : index
    %c0_7 = arith.constant 0 : index
    %6 = vector.load %arg4[%c0_6, %c0_7] : memref<32x128xf32, #tpu.memory_space<vmem>>, vector<32x128xf32>
    %c0_8 = arith.constant 0 : index
    %c0_9 = arith.constant 0 : index
    %7 = vector.load %arg5[%c0_8, %c0_9] : memref<1x128xf32, #tpu.memory_space<vmem>>, vector<1x128xf32>
    %8 = vector.shape_cast %7 : vector<1x128xf32> to vector<1x128xf32>
    %9 = vector.broadcast %8 : vector<1x128xf32> to vector<16x128xf32>
    %c0_10 = arith.constant 0 : index
    %c0_11 = arith.constant 0 : index
    %10 = vector.load %arg2[%c0_10, %c0_11] : memref<16x32xi32, #tpu.memory_space<vmem>>, vector<16x32xi32>
    %cst_12 = arith.constant 0.000000e+00 : f32
    %11 = vector.broadcast %cst_12 : f32 to vector<16x32xf32>
    %cst_13 = arith.constant 0.000000e+00 : f32
    %12 = vector.broadcast %cst_13 : f32 to vector<16x32xf32>
    %c0_i32 = arith.constant 0 : i32
    %c16_i32 = arith.constant 16 : i32
    %13 = arith.muli %c0_i32, %c16_i32 : i32
    %14 = tpu.assume_multiple %13, 16 : i32
    %15 = arith.index_cast %14 : i32 to index
    %c0_14 = arith.constant 0 : index
    %16 = vector.load %arg9[%15, %c0_14] : memref<128x128xbf16, #tpu.memory_space<vmem>>, vector<16x128xbf16>
    %17 = arith.extf %16 : vector<16x128xbf16> to vector<16x128xf32>
    %18 = arith.addf %17, %9 : vector<16x128xf32>
    %cst_15 = arith.constant dense<0.000000e+00> : vector<16x128xf32>
    %19 = tpu.matmul %11, %6, %cst_15 {dimension_numbers = #tpu.dot_dimension_numbers<[1], [0], [0], [1], [0, 0, 1, 1], [], []>} : vector<16x32xf32>, vector<32x128xf32>, vector<16x128xf32> -> vector<16x128xf32>
    %20 = arith.addf %18, %19 : vector<16x128xf32>
    %21 = vector.extract_strided_slice %20 {offsets = [0, 0], sizes = [16, 32], strides = [1, 1]} : vector<16x128xf32> to vector<16x32xf32>
    %22 = arith.negf %21 : vector<16x32xf32>
    %23 = math.exp %22 : vector<16x32xf32>
    %cst_16 = arith.constant 1.000000e+00 : f32
    %24 = vector.broadcast %cst_16 : f32 to vector<16x32xf32>
    %25 = arith.addf %24, %23 : vector<16x32xf32>
    %26 = arith.divf %24, %25 : vector<16x32xf32>
    %27 = vector.extract_strided_slice %20 {offsets = [0, 32], sizes = [16, 32], strides = [1, 1]} : vector<16x128xf32> to vector<16x32xf32>
    %28 = arith.negf %27 : vector<16x32xf32>
    %29 = math.exp %28 : vector<16x32xf32>
    %cst_17 = arith.constant 1.000000e+00 : f32
    %30 = vector.broadcast %cst_17 : f32 to vector<16x32xf32>
    %31 = arith.addf %30, %29 : vector<16x32xf32>
    %32 = arith.divf %30, %31 : vector<16x32xf32>
    %33 = vector.extract_strided_slice %20 {offsets = [0, 64], sizes = [16, 32], strides = [1, 1]} : vector<16x128xf32> to vector<16x32xf32>
    %34 = math.tanh %33 : vector<16x32xf32>
    %35 = vector.extract_strided_slice %20 {offsets = [0, 96], sizes = [16, 32], strides = [1, 1]} : vector<16x128xf32> to vector<16x32xf32>
    %36 = arith.negf %35 : vector<16x32xf32>
    %37 = math.exp %36 : vector<16x32xf32>
    %cst_18 = arith.constant 1.000000e+00 : f32
    %38 = vector.broadcast %cst_18 : f32 to vector<16x32xf32>
    %39 = arith.addf %38, %37 : vector<16x32xf32>
    %40 = arith.divf %38, %39 : vector<16x32xf32>
    %41 = arith.mulf %32, %12 : vector<16x32xf32>
    %42 = arith.mulf %26, %34 : vector<16x32xf32>
    %43 = arith.addf %41, %42 : vector<16x32xf32>
    %44 = math.tanh %43 : vector<16x32xf32>
    %45 = arith.mulf %40, %44 : vector<16x32xf32>
    %46 = vector.broadcast %c0_i32 : i32 to vector<16x32xi32>
    %47 = arith.cmpi slt, %46, %10 : vector<16x32xi32>
    %48 = arith.select %47, %45, %11 : vector<16x32xi1>, vector<16x32xf32>
    %49 = arith.select %47, %43, %12 : vector<16x32xi1>, vector<16x32xf32>
    %c1_i32 = arith.constant 1 : i32
    %c16_i32_19 = arith.constant 16 : i32
    %50 = arith.muli %c1_i32, %c16_i32_19 : i32
    %51 = tpu.assume_multiple %50, 16 : i32
    %52 = arith.index_cast %51 : i32 to index
    %c0_20 = arith.constant 0 : index
    %53 = vector.load %arg9[%52, %c0_20] : memref<128x128xbf16, #tpu.memory_space<vmem>>, vector<16x128xbf16>
    %54 = arith.extf %53 : vector<16x128xbf16> to vector<16x128xf32>
    %55 = arith.addf %54, %9 : vector<16x128xf32>
    %cst_21 = arith.constant dense<0.000000e+00> : vector<16x128xf32>
    %56 = tpu.matmul %48, %6, %cst_21 {dimension_numbers = #tpu.dot_dimension_numbers<[1], [0], [0], [1], [0, 0, 1, 1], [], []>} : vector<16x32xf32>, vector<32x128xf32>, vector<16x128xf32> -> vector<16x128xf32>
    %57 = arith.addf %55, %56 : vector<16x128xf32>
    %58 = vector.extract_strided_slice %57 {offsets = [0, 0], sizes = [16, 32], strides = [1, 1]} : vector<16x128xf32> to vector<16x32xf32>
    %59 = arith.negf %58 : vector<16x32xf32>
    %60 = math.exp %59 : vector<16x32xf32>
    %cst_22 = arith.constant 1.000000e+00 : f32
    %61 = vector.broadcast %cst_22 : f32 to vector<16x32xf32>
    %62 = arith.addf %61, %60 : vector<16x32xf32>
    %63 = arith.divf %61, %62 : vector<16x32xf32>
    %64 = vector.extract_strided_slice %57 {offsets = [0, 32], sizes = [16, 32], strides = [1, 1]} : vector<16x128xf32> to vector<16x32xf32>
    %65 = arith.negf %64 : vector<16x32xf32>
    %66 = math.exp %65 : vector<16x32xf32>
    %cst_23 = arith.constant 1.000000e+00 : f32
    %67 = vector.broadcast %cst_23 : f32 to vector<16x32xf32>
    %68 = arith.addf %67, %66 : vector<16x32xf32>
    %69 = arith.divf %67, %68 : vector<16x32xf32>
    %70 = vector.extract_strided_slice %57 {offsets = [0, 64], sizes = [16, 32], strides = [1, 1]} : vector<16x128xf32> to vector<16x32xf32>
    %71 = math.tanh %70 : vector<16x32xf32>
    %72 = vector.extract_strided_slice %57 {offsets = [0, 96], sizes = [16, 32], strides = [1, 1]} : vector<16x128xf32> to vector<16x32xf32>
    %73 = arith.negf %72 : vector<16x32xf32>
    %74 = math.exp %73 : vector<16x32xf32>
    %cst_24 = arith.constant 1.000000e+00 : f32
    %75 = vector.broadcast %cst_24 : f32 to vector<16x32xf32>
    %76 = arith.addf %75, %74 : vector<16x32xf32>
    %77 = arith.divf %75, %76 : vector<16x32xf32>
    %78 = arith.mulf %69, %49 : vector<16x32xf32>
    %79 = arith.mulf %63, %71 : vector<16x32xf32>
    %80 = arith.addf %78, %79 : vector<16x32xf32>
    %81 = math.tanh %80 : vector<16x32xf32>
    %82 = arith.mulf %77, %81 : vector<16x32xf32>
    %83 = vector.broadcast %c1_i32 : i32 to vector<16x32xi32>
    %84 = arith.cmpi slt, %83, %10 : vector<16x32xi32>
    %85 = arith.select %84, %82, %48 : vector<16x32xi1>, vector<16x32xf32>
    %86 = arith.select %84, %80, %49 : vector<16x32xi1>, vector<16x32xf32>
    %c2_i32 = arith.constant 2 : i32
    %c16_i32_25 = arith.constant 16 : i32
    %87 = arith.muli %c2_i32, %c16_i32_25 : i32
    %88 = tpu.assume_multiple %87, 16 : i32
    %89 = arith.index_cast %88 : i32 to index
    %c0_26 = arith.constant 0 : index
    %90 = vector.load %arg9[%89, %c0_26] : memref<128x128xbf16, #tpu.memory_space<vmem>>, vector<16x128xbf16>
    %91 = arith.extf %90 : vector<16x128xbf16> to vector<16x128xf32>
    %92 = arith.addf %91, %9 : vector<16x128xf32>
    %cst_27 = arith.constant dense<0.000000e+00> : vector<16x128xf32>
    %93 = tpu.matmul %85, %6, %cst_27 {dimension_numbers = #tpu.dot_dimension_numbers<[1], [0], [0], [1], [0, 0, 1, 1], [], []>} : vector<16x32xf32>, vector<32x128xf32>, vector<16x128xf32> -> vector<16x128xf32>
    %94 = arith.addf %92, %93 : vector<16x128xf32>
    %95 = vector.extract_strided_slice %94 {offsets = [0, 0], sizes = [16, 32], strides = [1, 1]} : vector<16x128xf32> to vector<16x32xf32>
    %96 = arith.negf %95 : vector<16x32xf32>
    %97 = math.exp %96 : vector<16x32xf32>
    %cst_28 = arith.constant 1.000000e+00 : f32
    %98 = vector.broadcast %cst_28 : f32 to vector<16x32xf32>
    %99 = arith.addf %98, %97 : vector<16x32xf32>
    %100 = arith.divf %98, %99 : vector<16x32xf32>
    %101 = vector.extract_strided_slice %94 {offsets = [0, 32], sizes = [16, 32], strides = [1, 1]} : vector<16x128xf32> to vector<16x32xf32>
    %102 = arith.negf %101 : vector<16x32xf32>
    %103 = math.exp %102 : vector<16x32xf32>
    %cst_29 = arith.constant 1.000000e+00 : f32
    %104 = vector.broadcast %cst_29 : f32 to vector<16x32xf32>
    %105 = arith.addf %104, %103 : vector<16x32xf32>
    %106 = arith.divf %104, %105 : vector<16x32xf32>
    %107 = vector.extract_strided_slice %94 {offsets = [0, 64], sizes = [16, 32], strides = [1, 1]} : vector<16x128xf32> to vector<16x32xf32>
    %108 = math.tanh %107 : vector<16x32xf32>
    %109 = vector.extract_strided_slice %94 {offsets = [0, 96], sizes = [16, 32], strides = [1, 1]} : vector<16x128xf32> to vector<16x32xf32>
    %110 = arith.negf %109 : vector<16x32xf32>
    %111 = math.exp %110 : vector<16x32xf32>
    %cst_30 = arith.constant 1.000000e+00 : f32
    %112 = vector.broadcast %cst_30 : f32 to vector<16x32xf32>
    %113 = arith.addf %112, %111 : vector<16x32xf32>
    %114 = arith.divf %112, %113 : vector<16x32xf32>
    %115 = arith.mulf %106, %86 : vector<16x32xf32>
    %116 = arith.mulf %100, %108 : vector<16x32xf32>
    %117 = arith.addf %115, %116 : vector<16x32xf32>
    %118 = math.tanh %117 : vector<16x32xf32>
    %119 = arith.mulf %114, %118 : vector<16x32xf32>
    %120 = vector.broadcast %c2_i32 : i32 to vector<16x32xi32>
    %121 = arith.cmpi slt, %120, %10 : vector<16x32xi32>
    %122 = arith.select %121, %119, %85 : vector<16x32xi1>, vector<16x32xf32>
    %123 = arith.select %121, %117, %86 : vector<16x32xi1>, vector<16x32xf32>
    %c3_i32 = arith.constant 3 : i32
    %c16_i32_31 = arith.constant 16 : i32
    %124 = arith.muli %c3_i32, %c16_i32_31 : i32
    %125 = tpu.assume_multiple %124, 16 : i32
    %126 = arith.index_cast %125 : i32 to index
    %c0_32 = arith.constant 0 : index
    %127 = vector.load %arg9[%126, %c0_32] : memref<128x128xbf16, #tpu.memory_space<vmem>>, vector<16x128xbf16>
    %128 = arith.extf %127 : vector<16x128xbf16> to vector<16x128xf32>
    %129 = arith.addf %128, %9 : vector<16x128xf32>
    %cst_33 = arith.constant dense<0.000000e+00> : vector<16x128xf32>
    %130 = tpu.matmul %122, %6, %cst_33 {dimension_numbers = #tpu.dot_dimension_numbers<[1], [0], [0], [1], [0, 0, 1, 1], [], []>} : vector<16x32xf32>, vector<32x128xf32>, vector<16x128xf32> -> vector<16x128xf32>
    %131 = arith.addf %129, %130 : vector<16x128xf32>
    %132 = vector.extract_strided_slice %131 {offsets = [0, 0], sizes = [16, 32], strides = [1, 1]} : vector<16x128xf32> to vector<16x32xf32>
    %133 = arith.negf %132 : vector<16x32xf32>
    %134 = math.exp %133 : vector<16x32xf32>
    %cst_34 = arith.constant 1.000000e+00 : f32
    %135 = vector.broadcast %cst_34 : f32 to vector<16x32xf32>
    %136 = arith.addf %135, %134 : vector<16x32xf32>
    %137 = arith.divf %135, %136 : vector<16x32xf32>
    %138 = vector.extract_strided_slice %131 {offsets = [0, 32], sizes = [16, 32], strides = [1, 1]} : vector<16x128xf32> to vector<16x32xf32>
    %139 = arith.negf %138 : vector<16x32xf32>
    %140 = math.exp %139 : vector<16x32xf32>
    %cst_35 = arith.constant 1.000000e+00 : f32
    %141 = vector.broadcast %cst_35 : f32 to vector<16x32xf32>
    %142 = arith.addf %141, %140 : vector<16x32xf32>
    %143 = arith.divf %141, %142 : vector<16x32xf32>
    %144 = vector.extract_strided_slice %131 {offsets = [0, 64], sizes = [16, 32], strides = [1, 1]} : vector<16x128xf32> to vector<16x32xf32>
    %145 = math.tanh %144 : vector<16x32xf32>
    %146 = vector.extract_strided_slice %131 {offsets = [0, 96], sizes = [16, 32], strides = [1, 1]} : vector<16x128xf32> to vector<16x32xf32>
    %147 = arith.negf %146 : vector<16x32xf32>
    %148 = math.exp %147 : vector<16x32xf32>
    %cst_36 = arith.constant 1.000000e+00 : f32
    %149 = vector.broadcast %cst_36 : f32 to vector<16x32xf32>
    %150 = arith.addf %149, %148 : vector<16x32xf32>
    %151 = arith.divf %149, %150 : vector<16x32xf32>
    %152 = arith.mulf %143, %123 : vector<16x32xf32>
    %153 = arith.mulf %137, %145 : vector<16x32xf32>
    %154 = arith.addf %152, %153 : vector<16x32xf32>
    %155 = math.tanh %154 : vector<16x32xf32>
    %156 = arith.mulf %151, %155 : vector<16x32xf32>
    %157 = vector.broadcast %c3_i32 : i32 to vector<16x32xi32>
    %158 = arith.cmpi slt, %157, %10 : vector<16x32xi32>
    %159 = arith.select %158, %156, %122 : vector<16x32xi1>, vector<16x32xf32>
    %160 = arith.select %158, %154, %123 : vector<16x32xi1>, vector<16x32xf32>
    %c4_i32 = arith.constant 4 : i32
    %c16_i32_37 = arith.constant 16 : i32
    %161 = arith.muli %c4_i32, %c16_i32_37 : i32
    %162 = tpu.assume_multiple %161, 16 : i32
    %163 = arith.index_cast %162 : i32 to index
    %c0_38 = arith.constant 0 : index
    %164 = vector.load %arg9[%163, %c0_38] : memref<128x128xbf16, #tpu.memory_space<vmem>>, vector<16x128xbf16>
    %165 = arith.extf %164 : vector<16x128xbf16> to vector<16x128xf32>
    %166 = arith.addf %165, %9 : vector<16x128xf32>
    %cst_39 = arith.constant dense<0.000000e+00> : vector<16x128xf32>
    %167 = tpu.matmul %159, %6, %cst_39 {dimension_numbers = #tpu.dot_dimension_numbers<[1], [0], [0], [1], [0, 0, 1, 1], [], []>} : vector<16x32xf32>, vector<32x128xf32>, vector<16x128xf32> -> vector<16x128xf32>
    %168 = arith.addf %166, %167 : vector<16x128xf32>
    %169 = vector.extract_strided_slice %168 {offsets = [0, 0], sizes = [16, 32], strides = [1, 1]} : vector<16x128xf32> to vector<16x32xf32>
    %170 = arith.negf %169 : vector<16x32xf32>
    %171 = math.exp %170 : vector<16x32xf32>
    %cst_40 = arith.constant 1.000000e+00 : f32
    %172 = vector.broadcast %cst_40 : f32 to vector<16x32xf32>
    %173 = arith.addf %172, %171 : vector<16x32xf32>
    %174 = arith.divf %172, %173 : vector<16x32xf32>
    %175 = vector.extract_strided_slice %168 {offsets = [0, 32], sizes = [16, 32], strides = [1, 1]} : vector<16x128xf32> to vector<16x32xf32>
    %176 = arith.negf %175 : vector<16x32xf32>
    %177 = math.exp %176 : vector<16x32xf32>
    %cst_41 = arith.constant 1.000000e+00 : f32
    %178 = vector.broadcast %cst_41 : f32 to vector<16x32xf32>
    %179 = arith.addf %178, %177 : vector<16x32xf32>
    %180 = arith.divf %178, %179 : vector<16x32xf32>
    %181 = vector.extract_strided_slice %168 {offsets = [0, 64], sizes = [16, 32], strides = [1, 1]} : vector<16x128xf32> to vector<16x32xf32>
    %182 = math.tanh %181 : vector<16x32xf32>
    %183 = vector.extract_strided_slice %168 {offsets = [0, 96], sizes = [16, 32], strides = [1, 1]} : vector<16x128xf32> to vector<16x32xf32>
    %184 = arith.negf %183 : vector<16x32xf32>
    %185 = math.exp %184 : vector<16x32xf32>
    %cst_42 = arith.constant 1.000000e+00 : f32
    %186 = vector.broadcast %cst_42 : f32 to vector<16x32xf32>
    %187 = arith.addf %186, %185 : vector<16x32xf32>
    %188 = arith.divf %186, %187 : vector<16x32xf32>
    %189 = arith.mulf %180, %160 : vector<16x32xf32>
    %190 = arith.mulf %174, %182 : vector<16x32xf32>
    %191 = arith.addf %189, %190 : vector<16x32xf32>
    %192 = math.tanh %191 : vector<16x32xf32>
    %193 = arith.mulf %188, %192 : vector<16x32xf32>
    %194 = vector.broadcast %c4_i32 : i32 to vector<16x32xi32>
    %195 = arith.cmpi slt, %194, %10 : vector<16x32xi32>
    %196 = arith.select %195, %193, %159 : vector<16x32xi1>, vector<16x32xf32>
    %197 = arith.select %195, %191, %160 : vector<16x32xi1>, vector<16x32xf32>
    %c5_i32 = arith.constant 5 : i32
    %c16_i32_43 = arith.constant 16 : i32
    %198 = arith.muli %c5_i32, %c16_i32_43 : i32
    %199 = tpu.assume_multiple %198, 16 : i32
    %200 = arith.index_cast %199 : i32 to index
    %c0_44 = arith.constant 0 : index
    %201 = vector.load %arg9[%200, %c0_44] : memref<128x128xbf16, #tpu.memory_space<vmem>>, vector<16x128xbf16>
    %202 = arith.extf %201 : vector<16x128xbf16> to vector<16x128xf32>
    %203 = arith.addf %202, %9 : vector<16x128xf32>
    %cst_45 = arith.constant dense<0.000000e+00> : vector<16x128xf32>
    %204 = tpu.matmul %196, %6, %cst_45 {dimension_numbers = #tpu.dot_dimension_numbers<[1], [0], [0], [1], [0, 0, 1, 1], [], []>} : vector<16x32xf32>, vector<32x128xf32>, vector<16x128xf32> -> vector<16x128xf32>
    %205 = arith.addf %203, %204 : vector<16x128xf32>
    %206 = vector.extract_strided_slice %205 {offsets = [0, 0], sizes = [16, 32], strides = [1, 1]} : vector<16x128xf32> to vector<16x32xf32>
    %207 = arith.negf %206 : vector<16x32xf32>
    %208 = math.exp %207 : vector<16x32xf32>
    %cst_46 = arith.constant 1.000000e+00 : f32
    %209 = vector.broadcast %cst_46 : f32 to vector<16x32xf32>
    %210 = arith.addf %209, %208 : vector<16x32xf32>
    %211 = arith.divf %209, %210 : vector<16x32xf32>
    %212 = vector.extract_strided_slice %205 {offsets = [0, 32], sizes = [16, 32], strides = [1, 1]} : vector<16x128xf32> to vector<16x32xf32>
    %213 = arith.negf %212 : vector<16x32xf32>
    %214 = math.exp %213 : vector<16x32xf32>
    %cst_47 = arith.constant 1.000000e+00 : f32
    %215 = vector.broadcast %cst_47 : f32 to vector<16x32xf32>
    %216 = arith.addf %215, %214 : vector<16x32xf32>
    %217 = arith.divf %215, %216 : vector<16x32xf32>
    %218 = vector.extract_strided_slice %205 {offsets = [0, 64], sizes = [16, 32], strides = [1, 1]} : vector<16x128xf32> to vector<16x32xf32>
    %219 = math.tanh %218 : vector<16x32xf32>
    %220 = vector.extract_strided_slice %205 {offsets = [0, 96], sizes = [16, 32], strides = [1, 1]} : vector<16x128xf32> to vector<16x32xf32>
    %221 = arith.negf %220 : vector<16x32xf32>
    %222 = math.exp %221 : vector<16x32xf32>
    %cst_48 = arith.constant 1.000000e+00 : f32
    %223 = vector.broadcast %cst_48 : f32 to vector<16x32xf32>
    %224 = arith.addf %223, %222 : vector<16x32xf32>
    %225 = arith.divf %223, %224 : vector<16x32xf32>
    %226 = arith.mulf %217, %197 : vector<16x32xf32>
    %227 = arith.mulf %211, %219 : vector<16x32xf32>
    %228 = arith.addf %226, %227 : vector<16x32xf32>
    %229 = math.tanh %228 : vector<16x32xf32>
    %230 = arith.mulf %225, %229 : vector<16x32xf32>
    %231 = vector.broadcast %c5_i32 : i32 to vector<16x32xi32>
    %232 = arith.cmpi slt, %231, %10 : vector<16x32xi32>
    %233 = arith.select %232, %230, %196 : vector<16x32xi1>, vector<16x32xf32>
    %234 = arith.select %232, %228, %197 : vector<16x32xi1>, vector<16x32xf32>
    %c6_i32 = arith.constant 6 : i32
    %c16_i32_49 = arith.constant 16 : i32
    %235 = arith.muli %c6_i32, %c16_i32_49 : i32
    %236 = tpu.assume_multiple %235, 16 : i32
    %237 = arith.index_cast %236 : i32 to index
    %c0_50 = arith.constant 0 : index
    %238 = vector.load %arg9[%237, %c0_50] : memref<128x128xbf16, #tpu.memory_space<vmem>>, vector<16x128xbf16>
    %239 = arith.extf %238 : vector<16x128xbf16> to vector<16x128xf32>
    %240 = arith.addf %239, %9 : vector<16x128xf32>
    %cst_51 = arith.constant dense<0.000000e+00> : vector<16x128xf32>
    %241 = tpu.matmul %233, %6, %cst_51 {dimension_numbers = #tpu.dot_dimension_numbers<[1], [0], [0], [1], [0, 0, 1, 1], [], []>} : vector<16x32xf32>, vector<32x128xf32>, vector<16x128xf32> -> vector<16x128xf32>
    %242 = arith.addf %240, %241 : vector<16x128xf32>
    %243 = vector.extract_strided_slice %242 {offsets = [0, 0], sizes = [16, 32], strides = [1, 1]} : vector<16x128xf32> to vector<16x32xf32>
    %244 = arith.negf %243 : vector<16x32xf32>
    %245 = math.exp %244 : vector<16x32xf32>
    %cst_52 = arith.constant 1.000000e+00 : f32
    %246 = vector.broadcast %cst_52 : f32 to vector<16x32xf32>
    %247 = arith.addf %246, %245 : vector<16x32xf32>
    %248 = arith.divf %246, %247 : vector<16x32xf32>
    %249 = vector.extract_strided_slice %242 {offsets = [0, 32], sizes = [16, 32], strides = [1, 1]} : vector<16x128xf32> to vector<16x32xf32>
    %250 = arith.negf %249 : vector<16x32xf32>
    %251 = math.exp %250 : vector<16x32xf32>
    %cst_53 = arith.constant 1.000000e+00 : f32
    %252 = vector.broadcast %cst_53 : f32 to vector<16x32xf32>
    %253 = arith.addf %252, %251 : vector<16x32xf32>
    %254 = arith.divf %252, %253 : vector<16x32xf32>
    %255 = vector.extract_strided_slice %242 {offsets = [0, 64], sizes = [16, 32], strides = [1, 1]} : vector<16x128xf32> to vector<16x32xf32>
    %256 = math.tanh %255 : vector<16x32xf32>
    %257 = vector.extract_strided_slice %242 {offsets = [0, 96], sizes = [16, 32], strides = [1, 1]} : vector<16x128xf32> to vector<16x32xf32>
    %258 = arith.negf %257 : vector<16x32xf32>
    %259 = math.exp %258 : vector<16x32xf32>
    %cst_54 = arith.constant 1.000000e+00 : f32
    %260 = vector.broadcast %cst_54 : f32 to vector<16x32xf32>
    %261 = arith.addf %260, %259 : vector<16x32xf32>
    %262 = arith.divf %260, %261 : vector<16x32xf32>
    %263 = arith.mulf %254, %234 : vector<16x32xf32>
    %264 = arith.mulf %248, %256 : vector<16x32xf32>
    %265 = arith.addf %263, %264 : vector<16x32xf32>
    %266 = math.tanh %265 : vector<16x32xf32>
    %267 = arith.mulf %262, %266 : vector<16x32xf32>
    %268 = vector.broadcast %c6_i32 : i32 to vector<16x32xi32>
    %269 = arith.cmpi slt, %268, %10 : vector<16x32xi32>
    %270 = arith.select %269, %267, %233 : vector<16x32xi1>, vector<16x32xf32>
    %271 = arith.select %269, %265, %234 : vector<16x32xi1>, vector<16x32xf32>
    %c7_i32 = arith.constant 7 : i32
    %c16_i32_55 = arith.constant 16 : i32
    %272 = arith.muli %c7_i32, %c16_i32_55 : i32
    %273 = tpu.assume_multiple %272, 16 : i32
    %274 = arith.index_cast %273 : i32 to index
    %c0_56 = arith.constant 0 : index
    %275 = vector.load %arg9[%274, %c0_56] : memref<128x128xbf16, #tpu.memory_space<vmem>>, vector<16x128xbf16>
    %276 = arith.extf %275 : vector<16x128xbf16> to vector<16x128xf32>
    %277 = arith.addf %276, %9 : vector<16x128xf32>
    %cst_57 = arith.constant dense<0.000000e+00> : vector<16x128xf32>
    %278 = tpu.matmul %270, %6, %cst_57 {dimension_numbers = #tpu.dot_dimension_numbers<[1], [0], [0], [1], [0, 0, 1, 1], [], []>} : vector<16x32xf32>, vector<32x128xf32>, vector<16x128xf32> -> vector<16x128xf32>
    %279 = arith.addf %277, %278 : vector<16x128xf32>
    %280 = vector.extract_strided_slice %279 {offsets = [0, 0], sizes = [16, 32], strides = [1, 1]} : vector<16x128xf32> to vector<16x32xf32>
    %281 = arith.negf %280 : vector<16x32xf32>
    %282 = math.exp %281 : vector<16x32xf32>
    %cst_58 = arith.constant 1.000000e+00 : f32
    %283 = vector.broadcast %cst_58 : f32 to vector<16x32xf32>
    %284 = arith.addf %283, %282 : vector<16x32xf32>
    %285 = arith.divf %283, %284 : vector<16x32xf32>
    %286 = vector.extract_strided_slice %279 {offsets = [0, 32], sizes = [16, 32], strides = [1, 1]} : vector<16x128xf32> to vector<16x32xf32>
    %287 = arith.negf %286 : vector<16x32xf32>
    %288 = math.exp %287 : vector<16x32xf32>
    %cst_59 = arith.constant 1.000000e+00 : f32
    %289 = vector.broadcast %cst_59 : f32 to vector<16x32xf32>
    %290 = arith.addf %289, %288 : vector<16x32xf32>
    %291 = arith.divf %289, %290 : vector<16x32xf32>
    %292 = vector.extract_strided_slice %279 {offsets = [0, 64], sizes = [16, 32], strides = [1, 1]} : vector<16x128xf32> to vector<16x32xf32>
    %293 = math.tanh %292 : vector<16x32xf32>
    %294 = vector.extract_strided_slice %279 {offsets = [0, 96], sizes = [16, 32], strides = [1, 1]} : vector<16x128xf32> to vector<16x32xf32>
    %295 = arith.negf %294 : vector<16x32xf32>
    %296 = math.exp %295 : vector<16x32xf32>
    %cst_60 = arith.constant 1.000000e+00 : f32
    %297 = vector.broadcast %cst_60 : f32 to vector<16x32xf32>
    %298 = arith.addf %297, %296 : vector<16x32xf32>
    %299 = arith.divf %297, %298 : vector<16x32xf32>
    %300 = arith.mulf %291, %271 : vector<16x32xf32>
    %301 = arith.mulf %285, %293 : vector<16x32xf32>
    %302 = arith.addf %300, %301 : vector<16x32xf32>
    %303 = math.tanh %302 : vector<16x32xf32>
    %304 = arith.mulf %299, %303 : vector<16x32xf32>
    %305 = vector.broadcast %c7_i32 : i32 to vector<16x32xi32>
    %306 = arith.cmpi slt, %305, %10 : vector<16x32xi32>
    %307 = arith.select %306, %304, %270 : vector<16x32xi1>, vector<16x32xf32>
    %308 = arith.select %306, %302, %271 : vector<16x32xi1>, vector<16x32xf32>
    %c8_i32 = arith.constant 8 : i32
    %309 = arith.truncf %307 : vector<16x32xf32> to vector<16x32xbf16>
    %c0_61 = arith.constant 0 : index
    %c0_62 = arith.constant 0 : index
    %310 = vector.load %arg6[%c0_61, %c0_62] : memref<32x128xbf16, #tpu.memory_space<vmem>>, vector<32x128xbf16>
    %cst_63 = arith.constant dense<0.000000e+00> : vector<16x128xf32>
    %311 = tpu.matmul %309, %310, %cst_63 {dimension_numbers = #tpu.dot_dimension_numbers<[1], [0], [0], [1], [0, 0, 1, 1], [], []>} : vector<16x32xbf16>, vector<32x128xbf16>, vector<16x128xf32> -> vector<16x128xf32>
    %c0_64 = arith.constant 0 : index
    %c0_65 = arith.constant 0 : index
    %312 = vector.load %arg7[%c0_64, %c0_65] : memref<1x128xf32, #tpu.memory_space<vmem>>, vector<1x128xf32>
    %313 = vector.broadcast %312 : vector<1x128xf32> to vector<16x128xf32>
    %314 = arith.addf %311, %313 : vector<16x128xf32>
    %c0_66 = arith.constant 0 : index
    %c0_67 = arith.constant 0 : index
    %315 = vector.load %arg8[%c0_66, %c0_67] : memref<16x128xf32, #tpu.memory_space<vmem>>, vector<16x128xf32>
    tpu.vector_store %arg8[%c0_66, %c0_67], %314 {strides = array<i32>} : memref<16x128xf32, #tpu.memory_space<vmem>>, vector<16x128xf32>,
    return
  }
  func.func @transform_0(%arg0: i32) -> (i32, i32, i32) {
    %c0_i32 = arith.constant 0 : i32
    %c0_i32_0 = arith.constant 0 : i32
    %c0_i32_1 = arith.constant 0 : i32
    return %c0_i32, %arg0, %c0_i32_0 : i32, i32, i32
  }
  func.func @transform_1(%arg0: i32) -> (i32, i32) {
    %c0_i32 = arith.constant 0 : i32
    %c0_i32_0 = arith.constant 0 : i32
    return %arg0, %c0_i32 : i32, i32
  }
  func.func @transform_2(%arg0: i32) -> (i32, i32) {
    %c0_i32 = arith.constant 0 : i32
    %c0_i32_0 = arith.constant 0 : i32
    %c0_i32_1 = arith.constant 0 : i32
    return %c0_i32, %c0_i32_0 : i32, i32
  }
  func.func @transform_3(%arg0: i32) -> (i32, i32) {
    %c0_i32 = arith.constant 0 : i32
    %c0_i32_0 = arith.constant 0 : i32
    %c0_i32_1 = arith.constant 0 : i32
    return %c0_i32, %c0_i32_0 : i32, i32
  }
  func.func @transform_4(%arg0: i32) -> (i32, i32) {
    %c0_i32 = arith.constant 0 : i32
    %c0_i32_0 = arith.constant 0 : i32
    %c0_i32_1 = arith.constant 0 : i32
    return %c0_i32, %c0_i32_0 : i32, i32
  }
  func.func @transform_5(%arg0: i32) -> (i32, i32) {
    %c0_i32 = arith.constant 0 : i32
    %c0_i32_0 = arith.constant 0 : i32
    %c0_i32_1 = arith.constant 0 : i32
    return %c0_i32, %c0_i32_0 : i32, i32
  }
  func.func @transform_6(%arg0: i32) -> (i32, i32) {
    %c0_i32 = arith.constant 0 : i32
    %c0_i32_0 = arith.constant 0 : i32
    %c0_i32_1 = arith.constant 0 : i32
    return %c0_i32, %c0_i32_0 : i32, i32
  }
  func.func @transform_7(%arg0: i32) -> (i32, i32) {
    %c0_i32 = arith.constant 0 : i32
    %c0_i32_0 = arith.constant 0 : i32
    return %arg0, %c0_i32 : i32, i32
  }
}

</mosaic_0001>

<bundles_post_ra>
// kernel: text_encoder_forward.1
= control target key start
LH: loop header
LB: loop body
LE: loop exit
PB: predicated region body
PF: predicated region fallthrough
CT: control target
= control target key end

     0   :  { %v2204_v1 = vmov 0.0   ;;  %vm99_vm0 = vcmask 261120   ;;  %s2205_s17 = smov 64   ;;  %s2206_s18 = smov 32   ;;  %vm2208_vm15 = vmmov 0   ;;  %s2725_s2 = inlined_call_operand.vmem [shape: bf16[32,128], index: 2, kind: input, shape index: {}]   ;;  %s2726_s0 = inlined_call_operand.vmem [shape: bf16[8,16,32], index: 0, kind: input, shape index: {}]   ;;  %s2727_s3 = inlined_call_operand.vmem [shape: f32[32,128], index: 3, kind: input, shape index: {}]   ;;  %s2728_s4 = inlined_call_operand.vmem [shape: f32[1,128], index: 4, kind: input, shape index: {}]   ;;  %s2729_s1 = inlined_call_operand.vmem [shape: s32[16,32], index: 1, kind: input, shape index: {}]   ;;  %s2730_s5 = inlined_call_operand.vmem [shape: bf16[32,128], index: 5, kind: input, shape index: {}]   ;;  %s2731_s6 = inlined_call_operand.vmem [shape: f32[1,128], index: 6, kind: input, shape index: {}]   ;;  %s2732_s7 = inlined_call_operand.vmem [shape: f32[16,128], index: 7, kind: output, shape index: {}]  }
   0x1   :  { %v2061_v0 = vld [vmem:[%s2725_s2 + $0x8] sm:$0xff]   ;;  %1963 = vmatprep.mubr.f32.mxu1 %v2204_v1  ;;  %v2062_v2 = vld [vmem:[%s2725_s2] sm:$0xff]   ;;  %v2266_v5 = vld [vmem:[%s2727_s3 + $0x18] sm:$0xff]  ;;  %s2207_s19 = smov 96  }
   0x2   :  { %1935 = vmatprep.subr.bf16.mxu0 %v2061_v0  ;;  %v2063_v3 = vld [vmem:[%s2726_s0] sm:$0xff]   ;;  %v2064_v4 = vld [vmem:[%s2726_s0 + $0x8] sm:$0xff]   ;;  %v2271_v6 = vld [vmem:[%s2727_s3 + $0x10] sm:$0xff]  ;;  %1955 = vmatprep.subr.mxu1 %v2266_v5 }
   0x3   :  { %1936 = vmatpush3.bf16.msra.mxu0 %v2061_v0  ;;  %1939 = vmatprep.mubr.msk.bf16.mxu0 %vm99_vm0, %v2063_v3  ;;  %v2277_v7 = vld [vmem:[%s2727_s3 + $0x8] sm:$0xff]  ;;  %v2283_v8 = vld [vmem:[%s2727_s3] sm:$0xff] }
   0x4   :  { %1937 = vmatprep.subr.bf16.mxu0 %v2062_v2  ;;  %1956 = vmatpush3.msra.mxu1 %v2266_v5  ;;  %v2316_v18 = vld [vmem:[%s2728_s4] ss:$0 sm:$0xff]  ;;  %v2339_v51 = vld [vmem:[%s2729_s1 + $0x8] sm:$0xff] }
   0x5   :  { %1957 = vmatprep.subr.mxu1 %v2271_v6  ;;  %v2333_v50 = vld [vmem:[%s2729_s1] sm:$0xff]  ;;  %vm449_vm2 = vcmp.gt.s32.totalorder %v2339_v51, 0  ;;  %vm617_vm4 = vcmp.gt.s32.totalorder %v2339_v51, 1  ;;  %vm785_vm6 = vcmp.gt.s32.totalorder %v2339_v51, 2  ;;  %vm953_vm8 = vcmp.gt.s32.totalorder %v2339_v51, 3 }
   0x6   :  { %1958 = vmatpush3.msra.mxu1 %v2271_v6  ;;  %vm448_vm1 = vcmp.gt.s32.totalorder %v2333_v50, 0  ;;  %vm616_vm3 = vcmp.gt.s32.totalorder %v2333_v50, 1  ;;  %vm784_vm5 = vcmp.gt.s32.totalorder %v2333_v50, 2  ;;  %vm952_vm7 = vcmp.gt.s32.totalorder %v2333_v50, 3 }
   0x7   :  { %1938 = vmatpush3.bf16.msra.mxu0 %v2062_v2  ;;  %1959 = vmatprep.subr.mxu1 %v2277_v7  ;;  %vm1120_vm9 = vcmp.gt.s32.totalorder %v2333_v50, 4  ;;  %vm1121_vm10 = vcmp.gt.s32.totalorder %v2339_v51, 4  ;;  %vm1288_vm11 = vcmp.gt.s32.totalorder %v2333_v50, 5  ;;  %vm1289_vm12 = vcmp.gt.s32.totalorder %v2339_v51, 5 }
   0x8   :  { %2021 = vmatprep.subr.mxu0 %v2266_v5  ;;  %1960 = vmatpush3.msra.mxu1 %v2277_v7  ;;  %vm1456_vm13 = vcmp.gt.s32.totalorder %v2333_v50, 6  ;;  %vm1457_vm14 = vcmp.gt.s32.totalorder %v2339_v51, 6 }
   0x9   :  { %1961 = vmatprep.subr.mxu1 %v2283_v8 }
   0xa   :  { %1940 = vmatmul.mubr.msk.bf16.vlgmr.msra.gmra.mxu0 %vm99_vm0, %v2064_v4  ;;  %1962 = vmatpush3.msra.mxu1 %v2283_v8 }
   0xb   :  { %2022 = vmatpush3.msra.mxu0 %v2266_v5  ;;  %1964 = vmatmul.mubr.f32.vlgmr.msra.gmra.mxu1 %v2204_v1 }
   0xc   :  { %2023 = vmatprep.subr.mxu0 %v2271_v6  ;;  %1966 = vmatprep.subr.mxu1 %v2266_v5 }
   0xd   :  { %1967 = vmatpush3.msra.mxu1 %v2266_v5  ;;  %2024 = vmatpush3.msra.mxu0 %v2271_v6 }
   0xe   :  { %1968 = vmatprep.subr.mxu1 %v2271_v6  ;;  %2025 = vmatprep.subr.mxu0 %v2277_v7 }
   0xf   :  { %1969 = vmatpush3.msra.mxu1 %v2271_v6  ;;  %2026 = vmatpush3.msra.mxu0 %v2277_v7 }
  0x10   :  { %1970 = vmatprep.subr.mxu1 %v2277_v7  ;;  %2027 = vmatprep.subr.mxu0 %v2283_v8 }
  0x11   :  { %1971 = vmatpush3.msra.mxu1 %v2277_v7  ;;  %2028 = vmatpush3.msra.mxu0 %v2283_v8 }
  0x12   :  { %1972 = vmatprep.subr.mxu1 %v2283_v8  ;;  %2043 = vmatprep.subr.bf16.mxu0 %v2204_v1 }
  0x13   :  { %1973 = vmatpush3.msra.mxu1 %v2283_v8 }
  0x14   :  { %1977 = vmatprep.subr.mxu1 %v2266_v5 }
  0xca   :  { %v1941_v9 = vpop.f32.mrf.mxu0 }
  0xcb   :  { %v1965_v15 = vpop.f32.mrf.mxu1 }
  0xcc   :  { %v158_v10 = vpop.f32.mrf.mxu0 }
  0xcd   :  { %v389_v21 = vpop.f32.mrf.mxu1 }
  0xce   :  { %v1942_v11 = vpop.f32.mrf.mxu0 }
  0xcf   :  { %v2311_v12 = vpack.c.bf16 %v1942_v11, %v1941_v9 }
  0xd0   :  { %v161_v13 = vpop.f32.mrf.mxu0 }
  0xd1   :  { %v1798_v14 = vpack.c.bf16 %v161_v13, %v158_v10  ;;  %v1842_v56 = vunpack.c.h.bf16 %v2311_v12  ;;  %v1841_v57 = vunpack.c.l.bf16 %v2311_v12 }
  0xd3   :  { %v1837_v16 = vunpack.c.l.bf16 %v1798_v14  ;;  %v1838_v17 = vunpack.c.h.bf16 %v1798_v14  ;;  %v476_v58 = vadd.f32 %v1842_v56, %v2316_v18  ;;  %v475_v61 = vadd.f32 %v1841_v57, %v2316_v18 }
  0xd5   :  { %v318_v19 = vadd.f32 %v1837_v16, %v2316_v18  ;;  %v319_v20 = vadd.f32 %v1838_v17, %v2316_v18 }
  0xd7   :  { %v398_v22 = vadd.f32 %v389_v21, %v318_v19  ;;  %v399_v23 = vadd.f32 %v1965_v15, %v319_v20 }
  0xd9   :  { %2073 = vtanh.f32 %v398_v22  ;;  %v1745_v26 = vmul.f32 -1.442695, %v398_v22  ;;  %v1746_v27 = vmul.f32 -1.442695, %v399_v23 }
  0xda   :  { %2075 = vtanh.f32 %v399_v23 }
  0xdb   :  { %2077 = vpow2.f32 %v1745_v26 }
  0xdc   :  { %2079 = vpow2.f32 %v1746_v27 }
  0xe6   :  { %v2074_v24 = vpop.eup %2073 }
  0xe7   :  { %418 = vrot.lane.b32.xlu0 %v2074_v24, %s2205_s17  ;;  %v2076_v25 = vpop.eup %2075 }
  0xe8   :  { %v2078_v28 = vpop.eup %2077 }
  0xe9   :  { %v406_v29 = vadd.f32 1.0, %v2078_v28  ;;  %v2080_v30 = vpop.eup %2079 }
  0xea   :  { %v407_v31 = vadd.f32 1.0, %v2080_v30 }
  0xeb   :  { %420 = vrot.lane.b32.xlu0 %v2076_v25, %s2205_s17  ;;  %2081 = vrcp.f32 %v406_v29 }
  0xec   :  { %2083 = vrcp.f32 %v407_v31 }
  0xf8   :  { %v2082_v32 = vpop.eup %2081 }
  0xf9   :  { %v2084_v35 = vpop.eup %2083  ;;  %v414_v38 = vmul.f32 0.0, %v2082_v32 }
  0xfa   :  { %v415_v41 = vmul.f32 0.0, %v2084_v35 }
 0x159   :  { %v419_v33 = vpop.permute.xlu0 %418 }
 0x15a   :  { %v424_v34 = vmul.f32 %v2082_v32, %v419_v33  ;;  %v2066_v33 = vld [vmem:[%s2726_s0 + $0x18] sm:$0xff]  }
 0x15c   :  { %428 = vrot.lane.b32.xlu1 %v424_v34, %s2206_s18 }
 0x15d   :  { %v421_v36 = vpop.permute.xlu0 %420 }
 0x15e   :  { %v425_v37 = vmul.f32 %v2084_v35, %v421_v36 }
 0x160   :  { %430 = vrot.lane.b32.xlu1 %v425_v37, %s2206_s18 }
 0x1ce   :  { %v429_v39 = vpop.permute.xlu1 %428 }
 0x1cf   :  { %v434_v40 = vadd.f32 %v429_v39, %v414_v38 }
 0x1d1   :  { %2085 = vtanh.f32 %v434_v40 }
 0x1d2   :  { %v431_v42 = vpop.permute.xlu1 %430 }
 0x1d3   :  { %v435_v43 = vadd.f32 %v431_v42, %v415_v41 }
 0x1d5   :  { %2087 = vtanh.f32 %v435_v43 }
 0x1de   :  { %v2086_v44 = vpop.eup %2085 }
 0x1df   :  { %440 = vrot.lane.b32.xlu0 %v2086_v44, %s2205_s17 }
 0x1e2   :  { %v2088_v45 = vpop.eup %2087 }
 0x1e3   :  { %442 = vrot.lane.b32.xlu1 %v2088_v45, %s2205_s17 }
 0x251   :  { %v441_v46 = vpop.permute.xlu0 %440 }
 0x252   :  { %v446_v47 = vmul.f32 %v2082_v32, %v441_v46  ;;  %v2065_v32 = vld [vmem:[%s2726_s0 + $0x10] sm:$0xff]  }
 0x253   :  { %1943 = vmatprep.mubr.msk.bf16.mxu0 %vm99_vm0, %v2065_v32 }
 0x254   :  { %452 = vrot.lane.b32.xlu0 %v446_v47, %s2206_s18  ;;  %1944 = vmatmul.mubr.msk.bf16.gmra.mxu0 %vm99_vm0, %v2066_v33 }
 0x255   :  { %v443_v48 = vpop.permute.xlu1 %442 }
 0x256   :  { %v447_v49 = vmul.f32 %v2084_v35, %v443_v48 }
 0x258   :  { %454 = vrot.lane.b32.xlu1 %v447_v49, %s2206_s18  ;;  %462 = vrot.lane.b32.xlu0 %v434_v40, %s2207_s19 }
 0x25c   :  { %464 = vrot.lane.b32.xlu1 %v435_v43, %s2207_s19 }
 0x2c6   :  { %v453_v52 = vpop.permute.xlu0 %452 }
 0x2c7   :  { %v2343_v53 = vsel %vm448_vm1, %v453_v52, 0.0 }
 0x2c8   :  { %1974 = vmatprep.mubr.msk.f32.mxu1 %vm99_vm0, %v2343_v53 }
 0x2ca   :  { %v455_v54 = vpop.permute.xlu1 %454  ;;  %v463_v4 = vpop.permute.xlu0 %462 }
 0x2cb   :  { %v2350_v55 = vsel %vm449_vm2, %v455_v54, 0.0  ;;  %v2376_v10 = vsel %vm448_vm1, %v463_v4, 0.0 }
 0x2cc   :  { %1975 = vmatmul.mubr.msk.f32.vlgmr.msra.gmra.mxu1 %vm99_vm0, %v2350_v55 }
 0x2cd   :  { %1978 = vmatpush3.msra.mxu1 %v2266_v5 }
 0x2ce   :  { %1979 = vmatprep.subr.mxu1 %v2271_v6  ;;  %v465_v2 = vpop.permute.xlu1 %464 }
 0x2cf   :  { %1980 = vmatpush3.msra.mxu1 %v2271_v6  ;;  %v2369_v9 = vsel %vm449_vm2, %v465_v2, 0.0 }
 0x2d0   :  { %1981 = vmatprep.subr.mxu1 %v2277_v7 }
 0x2d1   :  { %1982 = vmatpush3.msra.mxu1 %v2277_v7 }
 0x2d2   :  { %1983 = vmatprep.subr.mxu1 %v2283_v8 }
 0x2d3   :  { %1984 = vmatpush3.msra.mxu1 %v2283_v8 }
 0x2d4   :  { %1988 = vmatprep.subr.mxu1 %v2266_v5 }
 0x314   :  { %v1945_v40 = vpop.f32.mrf.mxu0 }
 0x316   :  { %v174_v41 = vpop.f32.mrf.mxu0 }
 0x318   :  { %v1946_v42 = vpop.f32.mrf.mxu0 }
 0x319   :  { %v2396_v43 = vpack.c.bf16 %v1946_v42, %v1945_v40 }
 0x31a   :  { %v177_v48 = vpop.f32.mrf.mxu0 }
 0x31b   :  { %v1808_v49 = vpack.c.bf16 %v177_v48, %v174_v41 }
 0x31d   :  { %v1846_v52 = vunpack.c.h.bf16 %v1808_v49 }
 0x31f   :  { %v644_v54 = vadd.f32 %v1846_v52, %v2316_v18 }
 0x38c   :  { %v1976_v59 = vpop.f32.mrf.mxu1 }
 0x38d   :  { %v559_v60 = vadd.f32 %v1976_v59, %v476_v58 }
 0x38e   :  { %v549_v62 = vpop.f32.mrf.mxu1 }
 0x38f   :  { %2089 = vtanh.f32 %v559_v60  ;;  %v558_v63 = vadd.f32 %v549_v62, %v475_v61  ;;  %v1750_v11 = vmul.f32 -1.442695, %v559_v60 }
 0x391   :  { %2091 = vtanh.f32 %v558_v63  ;;  %v1749_v12 = vmul.f32 -1.442695, %v558_v63 }
 0x392   :  { %2093 = vpow2.f32 %v1750_v11 }
 0x393   :  { %2095 = vpow2.f32 %v1749_v12 }
 0x39c   :  { %v2090_v0 = vpop.eup %2089 }
 0x39d   :  { %588 = vrot.lane.b32.xlu1 %v2090_v0, %s2205_s17 }
 0x39e   :  { %v2092_v3 = vpop.eup %2091 }
 0x39f   :  { %586 = vrot.lane.b32.xlu0 %v2092_v3, %s2205_s17  ;;  %v2094_v13 = vpop.eup %2093 }
 0x3a0   :  { %v2096_v14 = vpop.eup %2095  ;;  %v567_v15 = vadd.f32 1.0, %v2094_v13 }
 0x3a1   :  { %578 = vrot.lane.b32.xlu1 %v2369_v9, %s2206_s18  ;;  %v566_v16 = vadd.f32 1.0, %v2096_v14 }
 0x3a2   :  { %2097 = vrcp.f32 %v567_v15 }
 0x3a3   :  { %576 = vrot.lane.b32.xlu0 %v2376_v10, %s2206_s18  ;;  %2099 = vrcp.f32 %v566_v16 }
 0x3af   :  { %v2098_v17 = vpop.eup %2097 }
 0x3b0   :  { %v2100_v21 = vpop.eup %2099 }
 0x40f   :  { %v589_v19 = vpop.permute.xlu1 %588 }
 0x410   :  { %v593_v20 = vmul.f32 %v2098_v17, %v589_v19 }
 0x411   :  { %v587_v22 = vpop.permute.xlu0 %586 }
 0x412   :  { %598 = vrot.lane.b32.xlu1 %v593_v20, %s2206_s18  ;;  %v592_v23 = vmul.f32 %v2100_v21, %v587_v22 }
 0x413   :  { %v579_v24 = vpop.permute.xlu1 %578 }
 0x414   :  { %596 = vrot.lane.b32.xlu0 %v592_v23, %s2206_s18  ;;  %v583_v25 = vmul.f32 %v2098_v17, %v579_v24 }
 0x415   :  { %v577_v26 = vpop.permute.xlu0 %576 }
 0x416   :  { %v582_v29 = vmul.f32 %v2100_v21, %v577_v26 }
 0x484   :  { %v599_v27 = vpop.permute.xlu1 %598 }
 0x485   :  { %v603_v28 = vadd.f32 %v599_v27, %v583_v25 }
 0x486   :  { %v597_v30 = vpop.permute.xlu0 %596 }
 0x487   :  { %2101 = vtanh.f32 %v603_v28  ;;  %v602_v31 = vadd.f32 %v597_v30, %v582_v29 }
 0x489   :  { %2103 = vtanh.f32 %v602_v31 }
 0x494   :  { %v2102_v34 = vpop.eup %2101 }
 0x495   :  { %610 = vrot.lane.b32.xlu1 %v2102_v34, %s2205_s17 }
 0x496   :  { %v2104_v35 = vpop.eup %2103 }
 0x497   :  { %608 = vrot.lane.b32.xlu0 %v2104_v35, %s2205_s17 }
 0x507   :  { %v611_v36 = vpop.permute.xlu1 %610 }
 0x508   :  { %v615_v37 = vmul.f32 %v2098_v17, %v611_v36 }
 0x509   :  { %v609_v38 = vpop.permute.xlu0 %608 }
 0x50a   :  { %622 = vrot.lane.b32.xlu1 %v615_v37, %s2206_s18  ;;  %v614_v39 = vmul.f32 %v2100_v21, %v609_v38  ;;  %v1850_v38 = vunpack.c.h.bf16 %v2396_v43 }
 0x50c   :  { %620 = vrot.lane.b32.xlu0 %v614_v39, %s2206_s18  ;;  %v1849_v39 = vunpack.c.l.bf16 %v2396_v43  ;;  %v812_v40 = vadd.f32 %v1850_v38, %v2316_v18 }
 0x50e   :  { %632 = vrot.lane.b32.xlu1 %v603_v28, %s2207_s19 }
 0x510   :  { %630 = vrot.lane.b32.xlu0 %v602_v31, %s2207_s19 }
 0x57c   :  { %v623_v44 = vpop.permute.xlu1 %622 }
 0x57d   :  { %v2408_v47 = vsel %vm617_vm4, %v623_v44, %v2350_v55  ;;  %v811_v44 = vadd.f32 %v1849_v39, %v2316_v18 }
 0x57e   :  { %v621_v45 = vpop.permute.xlu0 %620 }
 0x57f   :  { %v2403_v46 = vsel %vm616_vm3, %v621_v45, %v2343_v53  ;;  %v1845_v53 = vunpack.c.l.bf16 %v1808_v49 }
 0x580   :  { %1985 = vmatprep.mubr.msk.f32.mxu1 %vm99_vm0, %v2403_v46  ;;  %v633_v61 = vpop.permute.xlu1 %632 }
 0x581   :  { %1986 = vmatmul.mubr.msk.f32.vlgmr.msra.gmra.mxu1 %vm99_vm0, %v2408_v47  ;;  %v643_v57 = vadd.f32 %v1845_v53, %v2316_v18  ;;  %v2429_v0 = vsel %vm617_vm4, %v633_v61, %v2369_v9 }
 0x582   :  { %1989 = vmatpush3.msra.mxu1 %v2266_v5  ;;  %v631_v63 = vpop.permute.xlu0 %630 }
 0x583   :  { %1990 = vmatprep.subr.mxu1 %v2271_v6  ;;  %v2436_v2 = vsel %vm616_vm3, %v631_v63, %v2376_v10 }
 0x584   :  { %1991 = vmatpush3.msra.mxu1 %v2271_v6 }
 0x585   :  { %1992 = vmatprep.subr.mxu1 %v2277_v7 }
 0x586   :  { %1993 = vmatpush3.msra.mxu1 %v2277_v7 }
 0x587   :  { %1994 = vmatprep.subr.mxu1 %v2283_v8 }
 0x588   :  { %1995 = vmatpush3.msra.mxu1 %v2283_v8 }
 0x589   :  { %1999 = vmatprep.subr.mxu1 %v2266_v5 }
 0x641   :  { %v1987_v55 = vpop.f32.mrf.mxu1 }
 0x642   :  { %v727_v56 = vadd.f32 %v1987_v55, %v644_v54 }
 0x643   :  { %v717_v58 = vpop.f32.mrf.mxu1 }
 0x644   :  { %2105 = vtanh.f32 %v727_v56  ;;  %v726_v59 = vadd.f32 %v717_v58, %v643_v57  ;;  %v1754_v3 = vmul.f32 -1.442695, %v727_v56 }
 0x646   :  { %2107 = vtanh.f32 %v726_v59  ;;  %v1753_v4 = vmul.f32 -1.442695, %v726_v59 }
 0x647   :  { %2109 = vpow2.f32 %v1754_v3 }
 0x648   :  { %2111 = vpow2.f32 %v1753_v4 }
 0x651   :  { %v2106_v60 = vpop.eup %2105 }
 0x652   :  { %756 = vrot.lane.b32.xlu1 %v2106_v60, %s2205_s17 }
 0x653   :  { %v2108_v62 = vpop.eup %2107 }
 0x654   :  { %754 = vrot.lane.b32.xlu0 %v2108_v62, %s2205_s17  ;;  %v2110_v11 = vpop.eup %2109 }
 0x655   :  { %v2112_v12 = vpop.eup %2111  ;;  %v735_v13 = vadd.f32 1.0, %v2110_v11 }
 0x656   :  { %746 = vrot.lane.b32.xlu1 %v2429_v0, %s2206_s18  ;;  %v734_v9 = vadd.f32 1.0, %v2112_v12 }
 0x657   :  { %2113 = vrcp.f32 %v735_v13 }
 0x658   :  { %744 = vrot.lane.b32.xlu0 %v2436_v2, %s2206_s18  ;;  %2115 = vrcp.f32 %v734_v9 }
 0x664   :  { %v2114_v14 = vpop.eup %2113 }
 0x665   :  { %v2116_v17 = vpop.eup %2115 }
 0x6c4   :  { %v757_v15 = vpop.permute.xlu1 %756 }
 0x6c5   :  { %v761_v16 = vmul.f32 %v2114_v14, %v757_v15 }
 0x6c6   :  { %v755_v19 = vpop.permute.xlu0 %754 }
 0x6c7   :  { %766 = vrot.lane.b32.xlu1 %v761_v16, %s2206_s18  ;;  %v760_v10 = vmul.f32 %v2116_v17, %v755_v19  ;;  %v2067_v16 = vld [vmem:[%s2726_s0 + $0x20] sm:$0xff]  }
 0x6c8   :  { %v747_v20 = vpop.permute.xlu1 %746  ;;  %1947 = vmatprep.mubr.msk.bf16.mxu0 %vm99_vm0, %v2067_v16 }
 0x6c9   :  { %764 = vrot.lane.b32.xlu0 %v760_v10, %s2206_s18  ;;  %v751_v21 = vmul.f32 %v2114_v14, %v747_v20 }
 0x6ca   :  { %v745_v22 = vpop.permute.xlu0 %744 }
 0x6cb   :  { %v750_v25 = vmul.f32 %v2116_v17, %v745_v22 }
 0x739   :  { %v767_v23 = vpop.permute.xlu1 %766 }
 0x73a   :  { %v771_v24 = vadd.f32 %v767_v23, %v751_v21 }
 0x73b   :  { %v765_v26 = vpop.permute.xlu0 %764 }
 0x73c   :  { %2117 = vtanh.f32 %v771_v24  ;;  %v770_v27 = vadd.f32 %v765_v26, %v750_v25 }
 0x73e   :  { %2119 = vtanh.f32 %v770_v27 }
 0x749   :  { %v2118_v28 = vpop.eup %2117 }
 0x74a   :  { %778 = vrot.lane.b32.xlu1 %v2118_v28, %s2205_s17 }
 0x74b   :  { %v2120_v29 = vpop.eup %2119 }
 0x74c   :  { %776 = vrot.lane.b32.xlu0 %v2120_v29, %s2205_s17 }
 0x7bc   :  { %v779_v30 = vpop.permute.xlu1 %778 }
 0x7bd   :  { %v783_v31 = vmul.f32 %v2114_v14, %v779_v30 }
 0x7be   :  { %v777_v32 = vpop.permute.xlu0 %776 }
 0x7bf   :  { %790 = vrot.lane.b32.xlu1 %v783_v31, %s2206_s18  ;;  %v782_v33 = vmul.f32 %v2116_v17, %v777_v32  ;;  %v2068_v17 = vld [vmem:[%s2726_s0 + $0x28] sm:$0xff]  }
 0x7c0   :  { %1948 = vmatmul.mubr.msk.bf16.gmra.mxu0 %vm99_vm0, %v2068_v17 }
 0x7c1   :  { %788 = vrot.lane.b32.xlu0 %v782_v33, %s2206_s18 }
 0x7c3   :  { %800 = vrot.lane.b32.xlu1 %v771_v24, %s2207_s19 }
 0x7c5   :  { %798 = vrot.lane.b32.xlu0 %v770_v27, %s2207_s19 }
 0x831   :  { %v791_v34 = vpop.permute.xlu1 %790 }
 0x832   :  { %v2458_v37 = vsel %vm785_vm6, %v791_v34, %v2408_v47 }
 0x833   :  { %v789_v35 = vpop.permute.xlu0 %788 }
 0x834   :  { %v2453_v36 = vsel %vm784_vm5, %v789_v35, %v2403_v46 }
 0x835   :  { %1996 = vmatprep.mubr.msk.f32.mxu1 %vm99_vm0, %v2453_v36  ;;  %v801_v48 = vpop.permute.xlu1 %800 }
 0x836   :  { %1997 = vmatmul.mubr.msk.f32.vlgmr.msra.gmra.mxu1 %vm99_vm0, %v2458_v37  ;;  %v2481_v43 = vsel %vm785_vm6, %v801_v48, %v2429_v0 }
 0x837   :  { %2000 = vmatpush3.msra.mxu1 %v2266_v5  ;;  %v799_v52 = vpop.permute.xlu0 %798 }
 0x838   :  { %2001 = vmatprep.subr.mxu1 %v2271_v6  ;;  %v2488_v53 = vsel %vm784_vm5, %v799_v52, %v2436_v2 }
 0x839   :  { %2002 = vmatpush3.msra.mxu1 %v2271_v6 }
 0x83a   :  { %2003 = vmatprep.subr.mxu1 %v2277_v7 }
 0x83b   :  { %2004 = vmatpush3.msra.mxu1 %v2277_v7 }
 0x83c   :  { %2005 = vmatprep.subr.mxu1 %v2283_v8 }
 0x83d   :  { %2006 = vmatpush3.msra.mxu1 %v2283_v8 }
 0x83e   :  { %2010 = vmatprep.subr.mxu1 %v2266_v5 }
 0x880   :  { %v1949_v24 = vpop.f32.mrf.mxu0 }
 0x882   :  { %v190_v25 = vpop.f32.mrf.mxu0 }
 0x884   :  { %v1950_v26 = vpop.f32.mrf.mxu0 }
 0x885   :  { %v2508_v27 = vpack.c.bf16 %v1950_v26, %v1949_v24 }
 0x886   :  { %v193_v32 = vpop.f32.mrf.mxu0 }
 0x887   :  { %v1818_v33 = vpack.c.bf16 %v193_v32, %v190_v25 }
 0x889   :  { %v1854_v34 = vunpack.c.h.bf16 %v1818_v33  ;;  %v1853_v35 = vunpack.c.l.bf16 %v1818_v33 }
 0x88b   :  { %v979_v39 = vadd.f32 %v1853_v35, %v2316_v18 }
 0x8f6   :  { %v1998_v41 = vpop.f32.mrf.mxu1 }
 0x8f7   :  { %v895_v42 = vadd.f32 %v1998_v41, %v812_v40 }
 0x8f8   :  { %v885_v45 = vpop.f32.mrf.mxu1 }
 0x8f9   :  { %2121 = vtanh.f32 %v895_v42  ;;  %v894_v46 = vadd.f32 %v885_v45, %v811_v44  ;;  %v1758_v54 = vmul.f32 -1.442695, %v895_v42 }
 0x8fb   :  { %2123 = vtanh.f32 %v894_v46  ;;  %v1757_v55 = vmul.f32 -1.442695, %v894_v46 }
 0x8fc   :  { %2125 = vpow2.f32 %v1758_v54 }
 0x8fd   :  { %2127 = vpow2.f32 %v1757_v55 }
 0x906   :  { %v2122_v47 = vpop.eup %2121 }
 0x907   :  { %924 = vrot.lane.b32.xlu1 %v2122_v47, %s2205_s17 }
 0x908   :  { %v2124_v49 = vpop.eup %2123 }
 0x909   :  { %922 = vrot.lane.b32.xlu0 %v2124_v49, %s2205_s17  ;;  %v2126_v56 = vpop.eup %2125 }
 0x90a   :  { %v2128_v57 = vpop.eup %2127  ;;  %v903_v58 = vadd.f32 1.0, %v2126_v56 }
 0x90b   :  { %914 = vrot.lane.b32.xlu1 %v2481_v43, %s2206_s18  ;;  %v902_v59 = vadd.f32 1.0, %v2128_v57 }
 0x90c   :  { %2129 = vrcp.f32 %v903_v58 }
 0x90d   :  { %912 = vrot.lane.b32.xlu0 %v2488_v53, %s2206_s18  ;;  %2131 = vrcp.f32 %v902_v59 }
 0x919   :  { %v2130_v60 = vpop.eup %2129 }
 0x91a   :  { %v2132_v63 = vpop.eup %2131 }
 0x979   :  { %v925_v61 = vpop.permute.xlu1 %924 }
 0x97a   :  { %v929_v62 = vmul.f32 %v2130_v60, %v925_v61 }
 0x97b   :  { %v923_v0 = vpop.permute.xlu0 %922 }
 0x97c   :  { %934 = vrot.lane.b32.xlu1 %v929_v62, %s2206_s18  ;;  %v928_v2 = vmul.f32 %v2132_v63, %v923_v0 }
 0x97d   :  { %v915_v3 = vpop.permute.xlu1 %914 }
 0x97e   :  { %932 = vrot.lane.b32.xlu0 %v928_v2, %s2206_s18  ;;  %v919_v4 = vmul.f32 %v2130_v60, %v915_v3 }
 0x97f   :  { %v913_v11 = vpop.permute.xlu0 %912 }
 0x980   :  { %v918_v9 = vmul.f32 %v2132_v63, %v913_v11 }
 0x9ee   :  { %v935_v12 = vpop.permute.xlu1 %934 }
 0x9ef   :  { %v939_v13 = vadd.f32 %v935_v12, %v919_v4 }
 0x9f0   :  { %v933_v14 = vpop.permute.xlu0 %932 }
 0x9f1   :  { %2133 = vtanh.f32 %v939_v13  ;;  %v938_v15 = vadd.f32 %v933_v14, %v918_v9 }
 0x9f3   :  { %2135 = vtanh.f32 %v938_v15 }
 0x9fe   :  { %v2134_v19 = vpop.eup %2133 }
 0x9ff   :  { %946 = vrot.lane.b32.xlu1 %v2134_v19, %s2205_s17 }
 0xa00   :  { %v2136_v10 = vpop.eup %2135 }
 0xa01   :  { %944 = vrot.lane.b32.xlu0 %v2136_v10, %s2205_s17 }
 0xa71   :  { %v947_v20 = vpop.permute.xlu1 %946 }
 0xa72   :  { %v951_v21 = vmul.f32 %v2130_v60, %v947_v20 }
 0xa73   :  { %v945_v22 = vpop.permute.xlu0 %944 }
 0xa74   :  { %958 = vrot.lane.b32.xlu1 %v951_v21, %s2206_s18  ;;  %v950_v23 = vmul.f32 %v2132_v63, %v945_v22  ;;  %v1858_v22 = vunpack.c.h.bf16 %v2508_v27 }
 0xa76   :  { %956 = vrot.lane.b32.xlu0 %v950_v23, %s2206_s18  ;;  %v1857_v23 = vunpack.c.l.bf16 %v2508_v27  ;;  %v1148_v24 = vadd.f32 %v1858_v22, %v2316_v18 }
 0xa78   :  { %968 = vrot.lane.b32.xlu1 %v939_v13, %s2207_s19  ;;  %v1147_v26 = vadd.f32 %v1857_v23, %v2316_v18 }
 0xa7a   :  { %966 = vrot.lane.b32.xlu0 %v938_v15, %s2207_s19 }
 0xae6   :  { %v959_v28 = vpop.permute.xlu1 %958 }
 0xae7   :  { %v2520_v31 = vsel %vm953_vm8, %v959_v28, %v2458_v37 }
 0xae8   :  { %v957_v29 = vpop.permute.xlu0 %956 }
 0xae9   :  { %v2515_v30 = vsel %vm952_vm7, %v957_v29, %v2453_v36  ;;  %v980_v36 = vadd.f32 %v1854_v34, %v2316_v18 }
 0xaea   :  { %2007 = vmatprep.mubr.msk.f32.mxu1 %vm99_vm0, %v2515_v30  ;;  %v969_v44 = vpop.permute.xlu1 %968 }
 0xaeb   :  { %2008 = vmatmul.mubr.msk.f32.vlgmr.msra.gmra.mxu1 %vm99_vm0, %v2520_v31  ;;  %v2541_v47 = vsel %vm953_vm8, %v969_v44, %v2481_v43 }
 0xaec   :  { %2011 = vmatpush3.msra.mxu1 %v2266_v5  ;;  %v967_v46 = vpop.permute.xlu0 %966 }
 0xaed   :  { %2012 = vmatprep.subr.mxu1 %v2271_v6  ;;  %v2548_v48 = vsel %vm952_vm7, %v967_v46, %v2488_v53 }
 0xaee   :  { %2013 = vmatpush3.msra.mxu1 %v2271_v6 }
 0xaef   :  { %2014 = vmatprep.subr.mxu1 %v2277_v7 }
 0xaf0   :  { %2015 = vmatpush3.msra.mxu1 %v2277_v7 }
 0xaf1   :  { %2016 = vmatprep.subr.mxu1 %v2283_v8 }
 0xaf2   :  { %2017 = vmatpush3.msra.mxu1 %v2283_v8 }
 0xaf3   :  { %2032 = vmatprep.subr.mxu1 %v2266_v5 }
 0xbab   :  { %v2009_v37 = vpop.f32.mrf.mxu1 }
 0xbac   :  { %v1063_v38 = vadd.f32 %v2009_v37, %v980_v36 }
 0xbad   :  { %v1053_v40 = vpop.f32.mrf.mxu1 }
 0xbae   :  { %2137 = vtanh.f32 %v1063_v38  ;;  %v1062_v41 = vadd.f32 %v1053_v40, %v979_v39  ;;  %v1762_v49 = vmul.f32 -1.442695, %v1063_v38 }
 0xbb0   :  { %2139 = vtanh.f32 %v1062_v41  ;;  %v1761_v52 = vmul.f32 -1.442695, %v1062_v41 }
 0xbb1   :  { %2141 = vpow2.f32 %v1762_v49 }
 0xbb2   :  { %2143 = vpow2.f32 %v1761_v52 }
 0xbbb   :  { %v2138_v42 = vpop.eup %2137 }
 0xbbc   :  { %1092 = vrot.lane.b32.xlu1 %v2138_v42, %s2205_s17 }
 0xbbd   :  { %v2140_v45 = vpop.eup %2139 }
 0xbbe   :  { %1090 = vrot.lane.b32.xlu0 %v2140_v45, %s2205_s17  ;;  %v2142_v54 = vpop.eup %2141 }
 0xbbf   :  { %v2144_v55 = vpop.eup %2143  ;;  %v1071_v56 = vadd.f32 1.0, %v2142_v54 }
 0xbc0   :  { %1082 = vrot.lane.b32.xlu1 %v2541_v47, %s2206_s18  ;;  %v1070_v43 = vadd.f32 1.0, %v2144_v55 }
 0xbc1   :  { %2145 = vrcp.f32 %v1071_v56  ;;  %v2069_v56 = vld [vmem:[%s2726_s0 + $0x30] sm:$0xff]  }
 0xbc2   :  { %1080 = vrot.lane.b32.xlu0 %v2548_v48, %s2206_s18  ;;  %2147 = vrcp.f32 %v1070_v43  ;;  %v2070_v43 = vld [vmem:[%s2726_s0 + $0x38] sm:$0xff]   ;;  %1951 = vmatprep.mubr.msk.bf16.mxu0 %vm99_vm0, %v2069_v56 }
 0xbc3   :  { %1952 = vmatmul.mubr.msk.bf16.gmra.mxu0 %vm99_vm0, %v2070_v43 }
 0xbce   :  { %v2146_v57 = vpop.eup %2145 }
 0xbcf   :  { %v2148_v60 = vpop.eup %2147 }
 0xc2e   :  { %v1093_v58 = vpop.permute.xlu1 %1092 }
 0xc2f   :  { %v1097_v59 = vmul.f32 %v2146_v57, %v1093_v58 }
 0xc30   :  { %v1091_v61 = vpop.permute.xlu0 %1090 }
 0xc31   :  { %1102 = vrot.lane.b32.xlu1 %v1097_v59, %s2206_s18  ;;  %v1096_v53 = vmul.f32 %v2148_v60, %v1091_v61 }
 0xc32   :  { %v1083_v62 = vpop.permute.xlu1 %1082 }
 0xc33   :  { %1100 = vrot.lane.b32.xlu0 %v1096_v53, %s2206_s18  ;;  %v1087_v63 = vmul.f32 %v2146_v57, %v1083_v62 }
 0xc34   :  { %v1081_v0 = vpop.permute.xlu0 %1080 }
 0xc35   :  { %v1086_v4 = vmul.f32 %v2148_v60, %v1081_v0 }
 0xc83   :  { %v1953_v62 = vpop.f32.mrf.mxu0 }
 0xca3   :  { %v1103_v2 = vpop.permute.xlu1 %1102 }
 0xca4   :  { %v1107_v3 = vadd.f32 %v1103_v2, %v1087_v63  ;;  %v206_v63 = vpop.f32.mrf.mxu0 }
 0xca5   :  { %v1101_v11 = vpop.permute.xlu0 %1100 }
 0xca6   :  { %2149 = vtanh.f32 %v1107_v3  ;;  %v1106_v12 = vadd.f32 %v1101_v11, %v1086_v4  ;;  %v1954_v0 = vpop.f32.mrf.mxu0 }
 0xca7   :  { %v2619_v2 = vpack.c.bf16 %v1954_v0, %v1953_v62 }
 0xca8   :  { %2151 = vtanh.f32 %v1106_v12 }
 0xca9   :  { %v1866_v43 = vunpack.c.h.bf16 %v2619_v2 }
 0xcb3   :  { %v2150_v13 = vpop.eup %2149 }
 0xcb4   :  { %1114 = vrot.lane.b32.xlu1 %v2150_v13, %s2205_s17  ;;  %v209_v13 = vpop.f32.mrf.mxu0 }
 0xcb5   :  { %v2152_v9 = vpop.eup %2151 }
 0xcb6   :  { %1112 = vrot.lane.b32.xlu0 %v2152_v9, %s2205_s17  ;;  %v1828_v9 = vpack.c.bf16 %v209_v13, %v206_v63 }
 0xd26   :  { %v1115_v14 = vpop.permute.xlu1 %1114 }
 0xd27   :  { %v1119_v15 = vmul.f32 %v2146_v57, %v1115_v14  ;;  %v1862_v14 = vunpack.c.h.bf16 %v1828_v9 }
 0xd28   :  { %v1113_v16 = vpop.permute.xlu0 %1112 }
 0xd29   :  { %1126 = vrot.lane.b32.xlu1 %v1119_v15, %s2206_s18  ;;  %v1118_v17 = vmul.f32 %v2148_v60, %v1113_v16  ;;  %v1861_v15 = vunpack.c.l.bf16 %v1828_v9  ;;  %v1316_v16 = vadd.f32 %v1862_v14, %v2316_v18 }
 0xd2b   :  { %1124 = vrot.lane.b32.xlu0 %v1118_v17, %s2206_s18 }
 0xd2d   :  { %1136 = vrot.lane.b32.xlu1 %v1107_v3, %s2207_s19 }
 0xd2f   :  { %1134 = vrot.lane.b32.xlu0 %v1106_v12, %s2207_s19 }
 0xd9b   :  { %v1127_v19 = vpop.permute.xlu1 %1126 }
 0xd9c   :  { %v2570_v21 = vsel %vm1121_vm10, %v1127_v19, %v2520_v31 }
 0xd9d   :  { %v1125_v10 = vpop.permute.xlu0 %1124 }
 0xd9e   :  { %v2565_v20 = vsel %vm1120_vm9, %v1125_v10, %v2515_v30  ;;  %v1315_v10 = vadd.f32 %v1861_v15, %v2316_v18 }
 0xd9f   :  { %2018 = vmatprep.mubr.msk.f32.mxu1 %vm99_vm0, %v2565_v20 }
 0xda0   :  { %2019 = vmatmul.mubr.msk.f32.vlgmr.msra.gmra.mxu1 %vm99_vm0, %v2570_v21 }
 0xda1   :  { %2033 = vmatpush3.msra.mxu1 %v2266_v5 }
 0xda2   :  { %2034 = vmatprep.subr.mxu1 %v2271_v6 }
 0xda3   :  { %2035 = vmatpush3.msra.mxu1 %v2271_v6 }
 0xda4   :  { %2036 = vmatprep.subr.mxu1 %v2277_v7 }
 0xda5   :  { %2037 = vmatpush3.msra.mxu1 %v2277_v7  ;;  %v1137_v7 = vpop.permute.xlu1 %1136 }
 0xda6   :  { %2038 = vmatprep.subr.mxu1 %v2283_v8  ;;  %v2592_v27 = vsel %vm1121_vm10, %v1137_v7, %v2541_v47 }
 0xda7   :  { %2039 = vmatpush3.msra.mxu1 %v2283_v8  ;;  %v1135_v8 = vpop.permute.xlu0 %1134 }
 0xda8   :  { %v2599_v31 = vsel %vm1120_vm9, %v1135_v8, %v2548_v48 }
 0xe60   :  { %v2020_v25 = vpop.f32.mrf.mxu1 }
 0xe61   :  { %v1231_v5 = vadd.f32 %v2020_v25, %v1148_v24 }
 0xe62   :  { %v1221_v28 = vpop.f32.mrf.mxu1 }
 0xe63   :  { %2153 = vtanh.f32 %v1231_v5  ;;  %v1230_v6 = vadd.f32 %v1221_v28, %v1147_v26  ;;  %v1766_v32 = vmul.f32 -1.442695, %v1231_v5 }
 0xe65   :  { %2155 = vtanh.f32 %v1230_v6  ;;  %v1765_v33 = vmul.f32 -1.442695, %v1230_v6 }
 0xe66   :  { %2157 = vpow2.f32 %v1766_v32 }
 0xe67   :  { %2159 = vpow2.f32 %v1765_v33 }
 0xe70   :  { %v2154_v29 = vpop.eup %2153 }
 0xe71   :  { %1260 = vrot.lane.b32.xlu1 %v2154_v29, %s2205_s17 }
 0xe72   :  { %v2156_v30 = vpop.eup %2155 }
 0xe73   :  { %1258 = vrot.lane.b32.xlu0 %v2156_v30, %s2205_s17  ;;  %v2158_v34 = vpop.eup %2157 }
 0xe74   :  { %v2160_v35 = vpop.eup %2159  ;;  %v1239_v36 = vadd.f32 1.0, %v2158_v34 }
 0xe75   :  { %1250 = vrot.lane.b32.xlu1 %v2592_v27, %s2206_s18  ;;  %v1238_v37 = vadd.f32 1.0, %v2160_v35 }
 0xe76   :  { %2161 = vrcp.f32 %v1239_v36 }
 0xe77   :  { %1248 = vrot.lane.b32.xlu0 %v2599_v31, %s2206_s18  ;;  %2163 = vrcp.f32 %v1238_v37 }
 0xe83   :  { %v2162_v38 = vpop.eup %2161 }
 0xe84   :  { %v2164_v41 = vpop.eup %2163 }
 0xee3   :  { %v1261_v39 = vpop.permute.xlu1 %1260 }
 0xee4   :  { %v1265_v40 = vmul.f32 %v2162_v38, %v1261_v39 }
 0xee5   :  { %v1259_v42 = vpop.permute.xlu0 %1258 }
 0xee6   :  { %1270 = vrot.lane.b32.xlu1 %v1265_v40, %s2206_s18  ;;  %v1264_v44 = vmul.f32 %v2164_v41, %v1259_v42 }
 0xee7   :  { %v1251_v45 = vpop.permute.xlu1 %1250 }
 0xee8   :  { %1268 = vrot.lane.b32.xlu0 %v1264_v44, %s2206_s18  ;;  %v1255_v46 = vmul.f32 %v2162_v38, %v1251_v45 }
 0xee9   :  { %v1249_v47 = vpop.permute.xlu0 %1248 }
 0xeea   :  { %v1254_v52 = vmul.f32 %v2164_v41, %v1249_v47 }
 0xf58   :  { %v1271_v48 = vpop.permute.xlu1 %1270 }
 0xf59   :  { %v1275_v49 = vadd.f32 %v1271_v48, %v1255_v46 }
 0xf5a   :  { %v1269_v54 = vpop.permute.xlu0 %1268 }
 0xf5b   :  { %2165 = vtanh.f32 %v1275_v49  ;;  %v1274_v55 = vadd.f32 %v1269_v54, %v1254_v52 }
 0xf5d   :  { %2167 = vtanh.f32 %v1274_v55 }
 0xf68   :  { %v2166_v57 = vpop.eup %2165 }
 0xf69   :  { %1282 = vrot.lane.b32.xlu1 %v2166_v57, %s2205_s17  ;;  %v1865_v57 = vunpack.c.l.bf16 %v2619_v2 }
 0xf6a   :  { %v2168_v58 = vpop.eup %2167 }
 0xf6b   :  { %1280 = vrot.lane.b32.xlu0 %v2168_v58, %s2205_s17  ;;  %v2201_v58 = vld [vmem:[%s2728_s4] ss:$0 sm:$0xff] }
 0xfdb   :  { %v1283_v59 = vpop.permute.xlu1 %1282 }
 0xfdc   :  { %v1287_v60 = vmul.f32 %v2162_v38, %v1283_v59  ;;  %v1484_v59 = vadd.f32 %v2201_v58, %v1866_v43 }
 0xfdd   :  { %v1281_v61 = vpop.permute.xlu0 %1280 }
 0xfde   :  { %1294 = vrot.lane.b32.xlu1 %v1287_v60, %s2206_s18  ;;  %v1286_v53 = vmul.f32 %v2164_v41, %v1281_v61 }
 0xfe0   :  { %1292 = vrot.lane.b32.xlu0 %v1286_v53, %s2206_s18  ;;  %v1483_v53 = vadd.f32 %v2201_v58, %v1865_v57 }
 0xfe2   :  { %1304 = vrot.lane.b32.xlu1 %v1275_v49, %s2207_s19 }
 0xfe4   :  { %1302 = vrot.lane.b32.xlu0 %v1274_v55, %s2207_s19 }
0x1050   :  { %v1295_v3 = vpop.permute.xlu1 %1294 }
0x1051   :  { %v2631_v12 = vsel %vm1289_vm12, %v1295_v3, %v2570_v21 }
0x1052   :  { %v1293_v4 = vpop.permute.xlu0 %1292 }
0x1053   :  { %v2626_v11 = vsel %vm1288_vm11, %v1293_v4, %v2565_v20 }
0x1054   :  { %2029 = vmatprep.mubr.msk.f32.mxu0 %vm99_vm0, %v2626_v11  ;;  %v1305_v23 = vpop.permute.xlu1 %1304 }
0x1055   :  { %2030 = vmatmul.mubr.msk.f32.vlgmr.msra.gmra.mxu0 %vm99_vm0, %v2631_v12  ;;  %v2644_v5 = vsel %vm1289_vm12, %v1305_v23, %v2592_v27 }
0x1056   :  { %v1303_v25 = vpop.permute.xlu0 %1302  ;;  %2047 = vmatprep.mubr.msk.bf16.mxu0 %vm2208_vm15, %v2204_v1 }
0x1057   :  { %v2651_v18 = vsel %vm1288_vm11, %v1303_v25, %v2599_v31 }
0x1115   :  { %v2031_v17 = vpop.f32.mrf.mxu0 }
0x1116   :  { %v1399_v19 = vadd.f32 %v2031_v17, %v1316_v16 }
0x1117   :  { %v1389_v20 = vpop.f32.mrf.mxu0 }
0x1118   :  { %2169 = vtanh.f32 %v1399_v19  ;;  %v1398_v21 = vadd.f32 %v1389_v20, %v1315_v10  ;;  %v1770_v26 = vmul.f32 -1.442695, %v1399_v19 }
0x111a   :  { %2171 = vtanh.f32 %v1398_v21  ;;  %v1769_v28 = vmul.f32 -1.442695, %v1398_v21 }
0x111b   :  { %2173 = vpow2.f32 %v1770_v26 }
0x111c   :  { %2175 = vpow2.f32 %v1769_v28 }
0x1125   :  { %v2170_v22 = vpop.eup %2169 }
0x1126   :  { %1428 = vrot.lane.b32.xlu1 %v2170_v22, %s2205_s17 }
0x1127   :  { %v2172_v24 = vpop.eup %2171 }
0x1128   :  { %1426 = vrot.lane.b32.xlu0 %v2172_v24, %s2205_s17  ;;  %v2174_v6 = vpop.eup %2173 }
0x1129   :  { %v2176_v29 = vpop.eup %2175  ;;  %v1407_v7 = vadd.f32 1.0, %v2174_v6  ;;  %v2071_v6 = vld [vmem:[%s2730_s5 + $0x8] sm:$0xff]  }
0x112a   :  { %1418 = vrot.lane.b32.xlu1 %v2644_v5, %s2206_s18  ;;  %v1406_v30 = vadd.f32 1.0, %v2176_v29  ;;  %2044 = vmatpush3.bf16.msra.mxu0 %v2071_v6 }
0x112b   :  { %2177 = vrcp.f32 %v1407_v7  ;;  %2045 = vmatprep.subr.bf16.mxu0 %v2204_v1 }
0x112c   :  { %1416 = vrot.lane.b32.xlu0 %v2651_v18, %s2206_s18  ;;  %2179 = vrcp.f32 %v1406_v30  ;;  %v2072_v30 = vld [vmem:[%s2730_s5] sm:$0xff]  }
0x112e   :  { %2046 = vmatpush3.bf16.msra.mxu0 %v2072_v30 }
0x1138   :  { %v2178_v8 = vpop.eup %2177 }
0x1139   :  { %v2180_v33 = vpop.eup %2179 }
0x1198   :  { %v1429_v27 = vpop.permute.xlu1 %1428 }
0x1199   :  { %v1433_v32 = vmul.f32 %v2178_v8, %v1429_v27 }
0x119a   :  { %v1427_v34 = vpop.permute.xlu0 %1426 }
0x119b   :  { %1438 = vrot.lane.b32.xlu1 %v1433_v32, %s2206_s18  ;;  %v1432_v31 = vmul.f32 %v2180_v33, %v1427_v34 }
0x119c   :  { %v1419_v35 = vpop.permute.xlu1 %1418 }
0x119d   :  { %1436 = vrot.lane.b32.xlu0 %v1432_v31, %s2206_s18  ;;  %v1423_v36 = vmul.f32 %v2178_v8, %v1419_v35  ;;  %v2202_v31 = vld [vmem:[%s2729_s1] sm:$0xff]  ;;  %v2203_v35 = vld [vmem:[%s2729_s1 + $0x8] sm:$0xff] }
0x119e   :  { %v1417_v37 = vpop.permute.xlu0 %1416  ;;  %vm1624_vm1 = vcmp.gt.s32.totalorder %v2202_v31, 7  ;;  %vm1625_vm2 = vcmp.gt.s32.totalorder %v2203_v35, 7 }
0x119f   :  { %v1422_v40 = vmul.f32 %v2180_v33, %v1417_v37 }
0x120d   :  { %v1439_v38 = vpop.permute.xlu1 %1438 }
0x120e   :  { %v1443_v39 = vadd.f32 %v1439_v38, %v1423_v36 }
0x120f   :  { %v1437_v41 = vpop.permute.xlu0 %1436 }
0x1210   :  { %2181 = vtanh.f32 %v1443_v39  ;;  %v1442_v42 = vadd.f32 %v1437_v41, %v1422_v40  ;;  %v1775_v41 = vld [vmem:[%s2731_s6] ss:$0 sm:$0xff] }
0x1212   :  { %2183 = vtanh.f32 %v1442_v42 }
0x121d   :  { %v2182_v44 = vpop.eup %2181 }
0x121e   :  { %1450 = vrot.lane.b32.xlu1 %v2182_v44, %s2205_s17 }
0x121f   :  { %v2184_v45 = vpop.eup %2183 }
0x1220   :  { %1448 = vrot.lane.b32.xlu0 %v2184_v45, %s2205_s17 }
0x1290   :  { %v1451_v46 = vpop.permute.xlu1 %1450 }
0x1291   :  { %v1455_v47 = vmul.f32 %v2178_v8, %v1451_v46 }
0x1292   :  { %v1449_v48 = vpop.permute.xlu0 %1448 }
0x1293   :  { %1462 = vrot.lane.b32.xlu1 %v1455_v47, %s2206_s18  ;;  %v1454_v49 = vmul.f32 %v2180_v33, %v1449_v48 }
0x1295   :  { %1460 = vrot.lane.b32.xlu0 %v1454_v49, %s2206_s18 }
0x1297   :  { %1472 = vrot.lane.b32.xlu1 %v1443_v39, %s2207_s19 }
0x1299   :  { %1470 = vrot.lane.b32.xlu0 %v1442_v42, %s2207_s19 }
0x1305   :  { %v1463_v52 = vpop.permute.xlu1 %1462 }
0x1306   :  { %v2673_v56 = vsel %vm1457_vm14, %v1463_v52, %v2631_v12 }
0x1307   :  { %v1461_v54 = vpop.permute.xlu0 %1460 }
0x1308   :  { %v2668_v55 = vsel %vm1456_vm13, %v1461_v54, %v2626_v11 }
0x1309   :  { %2040 = vmatprep.mubr.msk.f32.mxu1 %vm99_vm0, %v2668_v55  ;;  %v1473_v3 = vpop.permute.xlu1 %1472 }
0x130a   :  { %2041 = vmatmul.mubr.msk.f32.vlgmr.msra.gmra.mxu1 %vm99_vm0, %v2673_v56  ;;  %v1477_v2 = vsel %vm1457_vm14, %v1473_v3, %v2644_v5 }
0x130b   :  { %v1471_v11 = vpop.permute.xlu0 %1470 }
0x130c   :  { %v1476_v12 = vsel %vm1456_vm13, %v1471_v11, %v2651_v18 }
0x13ca   :  { %v2042_v60 = vpop.f32.mrf.mxu1 }
0x13cb   :  { %v1567_v61 = vadd.f32 %v2042_v60, %v1484_v59 }
0x13cc   :  { %v1557_v62 = vpop.f32.mrf.mxu1 }
0x13cd   :  { %2185 = vtanh.f32 %v1567_v61  ;;  %v1566_v63 = vadd.f32 %v1557_v62, %v1483_v53  ;;  %v1774_v13 = vmul.f32 -1.442695, %v1567_v61 }
0x13cf   :  { %2187 = vtanh.f32 %v1566_v63  ;;  %v1773_v9 = vmul.f32 -1.442695, %v1566_v63 }
0x13d0   :  { %2189 = vpow2.f32 %v1774_v13 }
0x13d1   :  { %2191 = vpow2.f32 %v1773_v9 }
0x13da   :  { %v2186_v0 = vpop.eup %2185 }
0x13db   :  { %1596 = vrot.lane.b32.xlu1 %v2186_v0, %s2205_s17 }
0x13dc   :  { %v2188_v4 = vpop.eup %2187 }
0x13dd   :  { %1594 = vrot.lane.b32.xlu0 %v2188_v4, %s2205_s17  ;;  %v2190_v14 = vpop.eup %2189 }
0x13de   :  { %v2192_v15 = vpop.eup %2191  ;;  %v1575_v16 = vadd.f32 1.0, %v2190_v14 }
0x13df   :  { %1586 = vrot.lane.b32.xlu1 %v1477_v2, %s2206_s18  ;;  %v1574_v17 = vadd.f32 1.0, %v2192_v15 }
0x13e0   :  { %2193 = vrcp.f32 %v1575_v16 }
0x13e1   :  { %1584 = vrot.lane.b32.xlu0 %v1476_v12, %s2206_s18  ;;  %2195 = vrcp.f32 %v1574_v17 }
0x13ed   :  { %v2194_v51 = vpop.eup %2193 }
0x13ee   :  { %v2196_v20 = vpop.eup %2195 }
0x144d   :  { %v1597_v19 = vpop.permute.xlu1 %1596 }
0x144e   :  { %v1601_v10 = vmul.f32 %v2194_v51, %v1597_v19 }
0x144f   :  { %v1595_v21 = vpop.permute.xlu0 %1594 }
0x1450   :  { %1606 = vrot.lane.b32.xlu1 %v1601_v10, %s2206_s18  ;;  %v1600_v50 = vmul.f32 %v2196_v20, %v1595_v21 }
0x1451   :  { %v1587_v22 = vpop.permute.xlu1 %1586 }
0x1452   :  { %1604 = vrot.lane.b32.xlu0 %v1600_v50, %s2206_s18  ;;  %v1591_v23 = vmul.f32 %v2194_v51, %v1587_v22 }
0x1453   :  { %v1585_v24 = vpop.permute.xlu0 %1584 }
0x1454   :  { %v1590_v18 = vmul.f32 %v2196_v20, %v1585_v24 }
0x14c2   :  { %v1607_v25 = vpop.permute.xlu1 %1606 }
0x14c3   :  { %v1611_v5 = vadd.f32 %v1607_v25, %v1591_v23 }
0x14c4   :  { %v1605_v26 = vpop.permute.xlu0 %1604 }
0x14c5   :  { %2197 = vtanh.f32 %v1611_v5  ;;  %v1610_v28 = vadd.f32 %v1605_v26, %v1590_v18 }
0x14c7   :  { %2199 = vtanh.f32 %v1610_v28 }
0x14d2   :  { %v2198_v29 = vpop.eup %2197 }
0x14d3   :  { %1618 = vrot.lane.b32.xlu1 %v2198_v29, %s2205_s17 }
0x14d4   :  { %v2200_v7 = vpop.eup %2199 }
0x14d5   :  { %1616 = vrot.lane.b32.xlu0 %v2200_v7, %s2205_s17 }
0x1545   :  { %v1619_v8 = vpop.permute.xlu1 %1618 }
0x1546   :  { %v1623_v32 = vmul.f32 %v2194_v51, %v1619_v8 }
0x1547   :  { %v1617_v27 = vpop.permute.xlu0 %1616 }
0x1548   :  { %v1622_v33 = vmul.f32 %v2196_v20, %v1617_v27 }
0x154a   :  { %v2056_v34 = vpack.i.bf16 %v1623_v32, %v1622_v33 }
0x154c   :  { %2057 = vrot.lane.b32.xlu0 %v2056_v34, %s2206_s18 }
0x15be   :  { %v2058_v36 = vpop.permute.xlu0 %2057 }
0x15bf   :  { %v2060_v37 = vunpack.i.h.bf16 %v2058_v36  ;;  %v2059_v1 = vunpack.i.l.bf16 %v2058_v36 }
0x15c1   :  { %v1635_v38 = vsel %vm1625_vm2, %v2060_v37, %v2673_v56  ;;  %v1634_v39 = vsel %vm1624_vm1, %v2059_v1, %v2668_v55 }
0x15c2   :  { %v1636_v40 = vpack.c.bf16 %v1635_v38, %v1634_v39 }
0x15c4   :  { %2048 = vmatmul.mubr.msk.bf16.vlgmr.msra.gmra.mxu0 %vm99_vm0, %v1636_v40 }
0x1684   :  { %v1697_v42 = vpop.f32.mrf.mxu0 }
0x1685   :  { %v1698_v44 = vadd.f32 %v1775_v41, %v1697_v42 }
0x1686   :  { %v2049_v45 = vpop.f32.mrf.mxu0 }
0x1687   :  { %1704 = vst [vmem:[%s2732_s7] sm:$0xff] %v1698_v44 }
0x1688   :  { %v1700_v46 = vpop.f32.mrf.mxu0 }
0x1689   :  { %v1701_v47 = vadd.f32 %v1775_v41, %v1700_v46 }
0x168a   :  { %v2050_v48 = vpop.f32.mrf.mxu0 }
0x168b   :  { %1705 = vst [vmem:[%s2732_s7 + $0x8] sm:$0xff] %v1701_v47 }

</bundles_post_ra>
